<compile_context>
chip_gen: v7x
topology: tpu7x:2x2x1
jax: 0.10.0
libtpu: 0.0.40
codegen_flags: <defaults>
</compile_context>

<pallas_src>
import jax
import jax.numpy as jnp
from jax.experimental import pallas as pl
from jax.experimental.pallas import tpu as pltpu


def _recurrence_kernel(gx_ref,      # (T_chunk*B, 4H) chunk of x@W_ih_lstm + b_ih + b_hh
                       w_hh_l_ref,  # (H, 4H)  LSTM recurrent weights
                       w_ih_r_ref,  # (H, H)   RNN input weights
                       w_hh_r_ref,  # (H, H)   RNN recurrent weights
                       b_r_ref,     # (1, H)   RNN bias (b_ih + b_hh)
                       hr_out_ref,  # (B, H)   out: RNN hidden state at step T-1
                       h_l_ref,     # (B, H)   scratch: LSTM hidden (persists across grid)
                       c_l_ref,     # (B, H)   scratch: LSTM cell state
                       h_r_ref):    # (B, H)   scratch: RNN hidden
    B, H = hr_out_ref.shape
    steps = gx_ref.shape[0] // B    # time steps in this chunk (static)

    @pl.when(pl.program_id(0) == 0)
    def _():
        h_l_ref[...] = jnp.zeros_like(h_l_ref)
        c_l_ref[...] = jnp.zeros_like(c_l_ref)
        h_r_ref[...] = jnp.zeros_like(h_r_ref)

    # Hoisted out of the unrolled recurrence (JAX does not CSE broadcast_in_dim).
    b_rb = jnp.broadcast_to(b_r_ref[...], (B, H))

    def step(i, carry):
        h_l, c_l, h_r = carry

        # ---- LSTM cell (PyTorch gate order i, f, g, o); x-part precomputed ----
        # Weight operands are read from VMEM *inside* the step: they do not fit
        # in the vreg file, so hoisting them into values would only add spills.
        gates = gx_ref[pl.ds(i * B, B), :] + jnp.dot(
            h_l, w_hh_l_ref[...], preferred_element_type=jnp.float32)       # (B, 4H)
        i_g = jax.nn.sigmoid(gates[:, 0 * H:1 * H])
        f_g = jax.nn.sigmoid(gates[:, 1 * H:2 * H])
        g_g = jnp.tanh(gates[:, 2 * H:3 * H])
        o_g = jax.nn.sigmoid(gates[:, 3 * H:4 * H])
        c_new = f_g * c_l + i_g * g_g
        h_new = o_g * jnp.tanh(c_new)

        # ---- RNN (tanh) cell: two (B,H)@(H,H) matmuls, no per-step concat ----
        hr_new = jnp.tanh(
            jnp.dot(h_new, w_ih_r_ref[...], preferred_element_type=jnp.float32)
            + jnp.dot(h_r, w_hh_r_ref[...], preferred_element_type=jnp.float32)
            + b_rb)                                                          # (B, H)
        return (h_new, c_new, hr_new)

    carry0 = (h_l_ref[...], c_l_ref[...], h_r_ref[...])
    h_l, c_l, h_r = jax.lax.fori_loop(0, steps, step, carry0, unroll=True)

    h_l_ref[...] = h_l
    c_l_ref[...] = c_l
    h_r_ref[...] = h_r
    hr_out_ref[...] = h_r


def _pick_time_chunk(T, B, H):
    """Choose a time-chunk size: divisor of T, sublane-aligned row count
    (T_chunk*B % 8 == 0), per-chunk gates block <= ~2 MiB, and at least two
    chunks when possible so the gates DMA pipelines behind the recurrence."""
    budget_rows = max(8, (2 * 1024 * 1024) // (4 * H * 4))   # f32 gate rows
    best = None
    for tc in range(1, T + 1):
        rows = tc * B
        if T % tc == 0 and rows % 8 == 0 and rows <= budget_rows:
            best = tc
    if best is None:
        return T                      # block == full array (always legal)
    if best == T:                     # prefer >= 2 chunks if an aligned one exists
        for tc in range(T - 1, 0, -1):
            if T % tc == 0 and (tc * B) % 8 == 0:
                return tc
    return best


@jax.jit
def lstm_rnn_hybrid_forward(x, params):
    """x: (B, T, I) float32, batch_first like the PyTorch module."""
    w_ih_l, w_hh_l, b_l, w_ih_r, w_hh_r, b_r, w_fc, b_fc = params
    B, T, I = x.shape
    H = w_hh_l.shape[0]

    # Hoisted, time-parallel input projection + fused LSTM biases: one large
    # matmul in XLA, time-major and flattened to (T*B, 4H) so per-chunk kernel
    # blocks are sublane-dense even when B < 8.
    gates_x = (jnp.einsum("bti,ig->tbg", x, w_ih_l) + b_l).reshape(T * B, 4 * H)

    t_chunk = _pick_time_chunk(T, B, H)
    rows = t_chunk * B
    grid = (T // t_chunk,)

    hr_last = pl.pallas_call(
        _recurrence_kernel,
        out_shape=jax.ShapeDtypeStruct((B, H), jnp.float32),
        grid_spec=pltpu.PrefetchScalarGridSpec(
            num_scalar_prefetch=0,
            grid=grid,
            in_specs=[
                pl.BlockSpec((rows, 4 * H), lambda t: (t, 0)),   # gates_x chunk
                pl.BlockSpec((H, 4 * H), lambda t: (0, 0)),      # W_hh_lstm (resident)
                pl.BlockSpec((H, H), lambda t: (0, 0)),          # W_ih_rnn
                pl.BlockSpec((H, H), lambda t: (0, 0)),          # W_hh_rnn
                pl.BlockSpec((1, H), lambda t: (0, 0)),          # b_rnn
            ],
            out_specs=pl.BlockSpec((B, H), lambda t: (0, 0)),
            scratch_shapes=[pltpu.VMEM((B, H), jnp.float32)] * 3,
        ),
        compiler_params=pltpu.CompilerParams(
            dimension_semantics=("arbitrary",),      # sequential time recurrence
            vmem_limit_bytes=32 * 1024 * 1024),
    )(gates_x, w_hh_l, w_ih_r, w_hh_r, b_r)

    # Final Linear on the last time step only (outside the kernel: O=1 would be
    # a masked 1-lane store inside the kernel).
    return hr_last @ w_fc + b_fc


def init_params(key, input_size, hidden_size, output_size):
    """Deterministic synthetic parameters matching nn.LSTM/nn.RNN/nn.Linear
    shapes, pre-transposed / pre-fused for the kernel's (x @ W) convention."""
    ks = jax.random.split(key, 10)
    s = 0.1
    H, I, O = hidden_size, input_size, output_size
    # nn.LSTM: weight_ih_l0 (4H, I), weight_hh_l0 (4H, H), biases (4H,)
    w_ih_l = (s * jax.random.normal(ks[0], (4 * H, I))).T.astype(jnp.float32)   # (I, 4H)
    w_hh_l = (s * jax.random.normal(ks[1], (4 * H, H))).T.astype(jnp.float32)   # (H, 4H)
    b_l = (s * jax.random.normal(ks[2], (4 * H,))
           + s * jax.random.normal(ks[3], (4 * H,))).reshape(1, 4 * H).astype(jnp.float32)
    # nn.RNN: weight_ih_l0 (H, H), weight_hh_l0 (H, H), biases (H,)
    w_ih_r = (s * jax.random.normal(ks[4], (H, H))).T.astype(jnp.float32)       # (H, H)
    w_hh_r = (s * jax.random.normal(ks[5], (H, H))).T.astype(jnp.float32)       # (H, H)
    b_r = (s * jax.random.normal(ks[6], (H,))
           + s * jax.random.normal(ks[7], (H,))).reshape(1, H).astype(jnp.float32)
    # nn.Linear: weight (O, H), bias (O,)
    w_fc = (s * jax.random.normal(ks[8], (O, H))).T.astype(jnp.float32)         # (H, O)
    b_fc = (s * jax.random.normal(ks[9], (O,))).reshape(1, O).astype(jnp.float32)
    return (w_ih_l, w_hh_l, b_l, w_ih_r, w_hh_r, b_r, w_fc, b_fc)


def reference_forward(x, params):
    """Pure-JAX reference (same math as the PyTorch module, zero init states)."""
    w_ih_l, w_hh_l, b_l, w_ih_r, w_hh_r, b_r, w_fc, b_fc = params
    B, T, I = x.shape
    H = w_hh_l.shape[0]

    def step(carry, x_t):
        h_l, c_l, h_r = carry
        gates = x_t @ w_ih_l + h_l @ w_hh_l + b_l
        i_g = jax.nn.sigmoid(gates[:, 0 * H:1 * H])
        f_g = jax.nn.sigmoid(gates[:, 1 * H:2 * H])
        g_g = jnp.tanh(gates[:, 2 * H:3 * H])
        o_g = jax.nn.sigmoid(gates[:, 3 * H:4 * H])
        c_new = f_g * c_l + i_g * g_g
        h_new = o_g * jnp.tanh(c_new)
        hr_new = jnp.tanh(h_new @ w_ih_r + h_r @ w_hh_r + b_r)
        return (h_new, c_new, hr_new), None

    init = (jnp.zeros((B, H), jnp.float32),
            jnp.zeros((B, H), jnp.float32),
            jnp.zeros((B, H), jnp.float32))
    (_, _, h_r), _ = jax.lax.scan(step, init, jnp.transpose(x, (1, 0, 2)))
    return h_r @ w_fc + b_fc


if __name__ == "__main__":
    # Small shapes; H is a multiple of 128 so gate slices in the kernel are
    # lane-aligned, and T_chunk*B is a multiple of 8 (sublane-aligned block).
    B, T, I, H, O = 2, 8, 16, 128, 1

    key = jax.random.PRNGKey(0)
    kx, kp = jax.random.split(key)
    x = jax.random.normal(kx, (B, T, I), dtype=jnp.float32)
    params = init_params(kp, input_size=I, hidden_size=H, output_size=O)

    out = jax.block_until_ready(lstm_rnn_hybrid_forward(x, params))
    ref = jax.block_until_ready(reference_forward(x, params))

    assert out.shape == (B, O)
    assert jnp.allclose(out, ref, atol=1e-4, rtol=1e-4), (out, ref)
    print("KERNEL_OK")
</pallas_src>

<mosaic_0001>
module attributes {stable_mosaic.version = 11 : i64} {
  func.func @_recurrence_kernel(%arg0: i32, %arg1: memref<8x512xf32, #tpu.memory_space<vmem>>, %arg2: memref<128x512xf32, #tpu.memory_space<vmem>>, %arg3: memref<128x128xf32, #tpu.memory_space<vmem>>, %arg4: memref<128x128xf32, #tpu.memory_space<vmem>>, %arg5: memref<1x128xf32, #tpu.memory_space<vmem>>, %arg6: memref<2x128xf32, #tpu.memory_space<vmem>>, %arg7: memref<2x128xf32, #tpu.memory_space<vmem>>, %arg8: memref<2x128xf32, #tpu.memory_space<vmem>>, %arg9: memref<2x128xf32, #tpu.memory_space<vmem>>) attributes {dimension_semantics = [#tpu.dimension_semantics<arbitrary>], iteration_bounds = array<i64: 2>, scalar_prefetch = 0 : i64, scratch_operands = 3 : i64, tpu.core_type = #tpu.core_type<tc>, window_params = [{transform_indices = @transform_0, window_bounds = array<i64: 8, 512>}, {pipeline_mode = #tpu.pipeline_mode<synchronous>, transform_indices = @transform_1, window_bounds = array<i64: 128, 512>}, {pipeline_mode = #tpu.pipeline_mode<synchronous>, transform_indices = @transform_2, window_bounds = array<i64: 128, 128>}, {pipeline_mode = #tpu.pipeline_mode<synchronous>, transform_indices = @transform_3, window_bounds = array<i64: 128, 128>}, {pipeline_mode = #tpu.pipeline_mode<synchronous>, transform_indices = @transform_4, window_bounds = array<i64: 1, 128>}, {pipeline_mode = #tpu.pipeline_mode<synchronous>, transform_indices = @transform_5, window_bounds = array<i64: 2, 128>}]} {
    %c0_i32 = arith.constant 0 : i32
    %0 = arith.cmpi eq, %arg0, %c0_i32 : i32
    %1 = arith.extui %0 : i1 to i32
    %c0_i32_0 = arith.constant 0 : i32
    %2 = arith.cmpi ne, %1, %c0_i32_0 : i32
    scf.if %2 {
      %cst_72 = arith.constant 0.000000e+00 : f32
      %165 = vector.broadcast %cst_72 : f32 to vector<2x128xf32>
      %c0_73 = arith.constant 0 : index
      %c0_74 = arith.constant 0 : index
      %166 = vector.load %arg7[%c0_73, %c0_74] : memref<2x128xf32, #tpu.memory_space<vmem>>, vector<2x128xf32>
      tpu.vector_store %arg7[%c0_73, %c0_74], %165 {strides = array<i32>} : memref<2x128xf32, #tpu.memory_space<vmem>>, vector<2x128xf32>,
      %cst_75 = arith.constant 0.000000e+00 : f32
      %167 = vector.broadcast %cst_75 : f32 to vector<2x128xf32>
      %c0_76 = arith.constant 0 : index
      %c0_77 = arith.constant 0 : index
      %168 = vector.load %arg8[%c0_76, %c0_77] : memref<2x128xf32, #tpu.memory_space<vmem>>, vector<2x128xf32>
      tpu.vector_store %arg8[%c0_76, %c0_77], %167 {strides = array<i32>} : memref<2x128xf32, #tpu.memory_space<vmem>>, vector<2x128xf32>,
      %cst_78 = arith.constant 0.000000e+00 : f32
      %169 = vector.broadcast %cst_78 : f32 to vector<2x128xf32>
      %c0_79 = arith.constant 0 : index
      %c0_80 = arith.constant 0 : index
      %170 = vector.load %arg9[%c0_79, %c0_80] : memref<2x128xf32, #tpu.memory_space<vmem>>, vector<2x128xf32>
      tpu.vector_store %arg9[%c0_79, %c0_80], %169 {strides = array<i32>} : memref<2x128xf32, #tpu.memory_space<vmem>>, vector<2x128xf32>,
    } else {
    }
    %c0 = arith.constant 0 : index
    %c0_1 = arith.constant 0 : index
    %3 = vector.load %arg5[%c0, %c0_1] : memref<1x128xf32, #tpu.memory_space<vmem>>, vector<1x128xf32>
    %4 = vector.shape_cast %3 : vector<1x128xf32> to vector<1x128xf32>
    %5 = vector.broadcast %4 : vector<1x128xf32> to vector<2x128xf32>
    %c0_2 = arith.constant 0 : index
    %c0_3 = arith.constant 0 : index
    %6 = vector.load %arg7[%c0_2, %c0_3] : memref<2x128xf32, #tpu.memory_space<vmem>>, vector<2x128xf32>
    %c0_4 = arith.constant 0 : index
    %c0_5 = arith.constant 0 : index
    %7 = vector.load %arg8[%c0_4, %c0_5] : memref<2x128xf32, #tpu.memory_space<vmem>>, vector<2x128xf32>
    %c0_6 = arith.constant 0 : index
    %c0_7 = arith.constant 0 : index
    %8 = vector.load %arg9[%c0_6, %c0_7] : memref<2x128xf32, #tpu.memory_space<vmem>>, vector<2x128xf32>
    %c0_i32_8 = arith.constant 0 : i32
    %c2_i32 = arith.constant 2 : i32
    %9 = arith.muli %c0_i32_8, %c2_i32 : i32
    %10 = arith.index_cast %9 : i32 to index
    %c0_9 = arith.constant 0 : index
    %11 = vector.load %arg1[%10, %c0_9] : memref<8x512xf32, #tpu.memory_space<vmem>>, vector<2x512xf32>
    %c0_10 = arith.constant 0 : index
    %c0_11 = arith.constant 0 : index
    %12 = vector.load %arg2[%c0_10, %c0_11] : memref<128x512xf32, #tpu.memory_space<vmem>>, vector<128x512xf32>
    %cst = arith.constant dense<0.000000e+00> : vector<2x512xf32>
    %13 = tpu.matmul %6, %12, %cst {dimension_numbers = #tpu.dot_dimension_numbers<[1], [0], [0], [1], [0, 0, 1, 1], [], []>} : vector<2x128xf32>, vector<128x512xf32>, vector<2x512xf32> -> vector<2x512xf32>
    %14 = arith.addf %11, %13 : vector<2x512xf32>
    %15 = vector.extract_strided_slice %14 {offsets = [0, 0], sizes = [2, 128], strides = [1, 1]} : vector<2x512xf32> to vector<2x128xf32>
    %16 = arith.negf %15 : vector<2x128xf32>
    %17 = math.exp %16 : vector<2x128xf32>
    %cst_12 = arith.constant 1.000000e+00 : f32
    %18 = vector.broadcast %cst_12 : f32 to vector<2x128xf32>
    %19 = arith.addf %18, %17 : vector<2x128xf32>
    %20 = arith.divf %18, %19 : vector<2x128xf32>
    %21 = vector.extract_strided_slice %14 {offsets = [0, 128], sizes = [2, 128], strides = [1, 1]} : vector<2x512xf32> to vector<2x128xf32>
    %22 = arith.negf %21 : vector<2x128xf32>
    %23 = math.exp %22 : vector<2x128xf32>
    %cst_13 = arith.constant 1.000000e+00 : f32
    %24 = vector.broadcast %cst_13 : f32 to vector<2x128xf32>
    %25 = arith.addf %24, %23 : vector<2x128xf32>
    %26 = arith.divf %24, %25 : vector<2x128xf32>
    %27 = vector.extract_strided_slice %14 {offsets = [0, 256], sizes = [2, 128], strides = [1, 1]} : vector<2x512xf32> to vector<2x128xf32>
    %28 = math.tanh %27 : vector<2x128xf32>
    %29 = vector.extract_strided_slice %14 {offsets = [0, 384], sizes = [2, 128], strides = [1, 1]} : vector<2x512xf32> to vector<2x128xf32>
    %30 = arith.negf %29 : vector<2x128xf32>
    %31 = math.exp %30 : vector<2x128xf32>
    %cst_14 = arith.constant 1.000000e+00 : f32
    %32 = vector.broadcast %cst_14 : f32 to vector<2x128xf32>
    %33 = arith.addf %32, %31 : vector<2x128xf32>
    %34 = arith.divf %32, %33 : vector<2x128xf32>
    %35 = arith.mulf %26, %7 : vector<2x128xf32>
    %36 = arith.mulf %20, %28 : vector<2x128xf32>
    %37 = arith.addf %35, %36 : vector<2x128xf32>
    %38 = math.tanh %37 : vector<2x128xf32>
    %39 = arith.mulf %34, %38 : vector<2x128xf32>
    %c0_15 = arith.constant 0 : index
    %c0_16 = arith.constant 0 : index
    %40 = vector.load %arg3[%c0_15, %c0_16] : memref<128x128xf32, #tpu.memory_space<vmem>>, vector<128x128xf32>
    %cst_17 = arith.constant dense<0.000000e+00> : vector<2x128xf32>
    %41 = tpu.matmul %39, %40, %cst_17 {dimension_numbers = #tpu.dot_dimension_numbers<[1], [0], [0], [1], [0, 0, 1, 1], [], []>} : vector<2x128xf32>, vector<128x128xf32>, vector<2x128xf32> -> vector<2x128xf32>
    %c0_18 = arith.constant 0 : index
    %c0_19 = arith.constant 0 : index
    %42 = vector.load %arg4[%c0_18, %c0_19] : memref<128x128xf32, #tpu.memory_space<vmem>>, vector<128x128xf32>
    %cst_20 = arith.constant dense<0.000000e+00> : vector<2x128xf32>
    %43 = tpu.matmul %8, %42, %cst_20 {dimension_numbers = #tpu.dot_dimension_numbers<[1], [0], [0], [1], [0, 0, 1, 1], [], []>} : vector<2x128xf32>, vector<128x128xf32>, vector<2x128xf32> -> vector<2x128xf32>
    %44 = arith.addf %41, %43 : vector<2x128xf32>
    %45 = arith.addf %44, %5 : vector<2x128xf32>
    %46 = math.tanh %45 : vector<2x128xf32>
    %c1_i32 = arith.constant 1 : i32
    %c2_i32_21 = arith.constant 2 : i32
    %47 = arith.muli %c1_i32, %c2_i32_21 : i32
    %48 = arith.index_cast %47 : i32 to index
    %c0_22 = arith.constant 0 : index
    %49 = vector.load %arg1[%48, %c0_22] : memref<8x512xf32, #tpu.memory_space<vmem>>, vector<2x512xf32>
    %c0_23 = arith.constant 0 : index
    %c0_24 = arith.constant 0 : index
    %50 = vector.load %arg2[%c0_23, %c0_24] : memref<128x512xf32, #tpu.memory_space<vmem>>, vector<128x512xf32>
    %cst_25 = arith.constant dense<0.000000e+00> : vector<2x512xf32>
    %51 = tpu.matmul %39, %50, %cst_25 {dimension_numbers = #tpu.dot_dimension_numbers<[1], [0], [0], [1], [0, 0, 1, 1], [], []>} : vector<2x128xf32>, vector<128x512xf32>, vector<2x512xf32> -> vector<2x512xf32>
    %52 = arith.addf %49, %51 : vector<2x512xf32>
    %53 = vector.extract_strided_slice %52 {offsets = [0, 0], sizes = [2, 128], strides = [1, 1]} : vector<2x512xf32> to vector<2x128xf32>
    %54 = arith.negf %53 : vector<2x128xf32>
    %55 = math.exp %54 : vector<2x128xf32>
    %cst_26 = arith.constant 1.000000e+00 : f32
    %56 = vector.broadcast %cst_26 : f32 to vector<2x128xf32>
    %57 = arith.addf %56, %55 : vector<2x128xf32>
    %58 = arith.divf %56, %57 : vector<2x128xf32>
    %59 = vector.extract_strided_slice %52 {offsets = [0, 128], sizes = [2, 128], strides = [1, 1]} : vector<2x512xf32> to vector<2x128xf32>
    %60 = arith.negf %59 : vector<2x128xf32>
    %61 = math.exp %60 : vector<2x128xf32>
    %cst_27 = arith.constant 1.000000e+00 : f32
    %62 = vector.broadcast %cst_27 : f32 to vector<2x128xf32>
    %63 = arith.addf %62, %61 : vector<2x128xf32>
    %64 = arith.divf %62, %63 : vector<2x128xf32>
    %65 = vector.extract_strided_slice %52 {offsets = [0, 256], sizes = [2, 128], strides = [1, 1]} : vector<2x512xf32> to vector<2x128xf32>
    %66 = math.tanh %65 : vector<2x128xf32>
    %67 = vector.extract_strided_slice %52 {offsets = [0, 384], sizes = [2, 128], strides = [1, 1]} : vector<2x512xf32> to vector<2x128xf32>
    %68 = arith.negf %67 : vector<2x128xf32>
    %69 = math.exp %68 : vector<2x128xf32>
    %cst_28 = arith.constant 1.000000e+00 : f32
    %70 = vector.broadcast %cst_28 : f32 to vector<2x128xf32>
    %71 = arith.addf %70, %69 : vector<2x128xf32>
    %72 = arith.divf %70, %71 : vector<2x128xf32>
    %73 = arith.mulf %64, %37 : vector<2x128xf32>
    %74 = arith.mulf %58, %66 : vector<2x128xf32>
    %75 = arith.addf %73, %74 : vector<2x128xf32>
    %76 = math.tanh %75 : vector<2x128xf32>
    %77 = arith.mulf %72, %76 : vector<2x128xf32>
    %c0_29 = arith.constant 0 : index
    %c0_30 = arith.constant 0 : index
    %78 = vector.load %arg3[%c0_29, %c0_30] : memref<128x128xf32, #tpu.memory_space<vmem>>, vector<128x128xf32>
    %cst_31 = arith.constant dense<0.000000e+00> : vector<2x128xf32>
    %79 = tpu.matmul %77, %78, %cst_31 {dimension_numbers = #tpu.dot_dimension_numbers<[1], [0], [0], [1], [0, 0, 1, 1], [], []>} : vector<2x128xf32>, vector<128x128xf32>, vector<2x128xf32> -> vector<2x128xf32>
    %c0_32 = arith.constant 0 : index
    %c0_33 = arith.constant 0 : index
    %80 = vector.load %arg4[%c0_32, %c0_33] : memref<128x128xf32, #tpu.memory_space<vmem>>, vector<128x128xf32>
    %cst_34 = arith.constant dense<0.000000e+00> : vector<2x128xf32>
    %81 = tpu.matmul %46, %80, %cst_34 {dimension_numbers = #tpu.dot_dimension_numbers<[1], [0], [0], [1], [0, 0, 1, 1], [], []>} : vector<2x128xf32>, vector<128x128xf32>, vector<2x128xf32> -> vector<2x128xf32>
    %82 = arith.addf %79, %81 : vector<2x128xf32>
    %83 = arith.addf %82, %5 : vector<2x128xf32>
    %84 = math.tanh %83 : vector<2x128xf32>
    %c2_i32_35 = arith.constant 2 : i32
    %c2_i32_36 = arith.constant 2 : i32
    %85 = arith.muli %c2_i32_35, %c2_i32_36 : i32
    %86 = arith.index_cast %85 : i32 to index
    %c0_37 = arith.constant 0 : index
    %87 = vector.load %arg1[%86, %c0_37] : memref<8x512xf32, #tpu.memory_space<vmem>>, vector<2x512xf32>
    %c0_38 = arith.constant 0 : index
    %c0_39 = arith.constant 0 : index
    %88 = vector.load %arg2[%c0_38, %c0_39] : memref<128x512xf32, #tpu.memory_space<vmem>>, vector<128x512xf32>
    %cst_40 = arith.constant dense<0.000000e+00> : vector<2x512xf32>
    %89 = tpu.matmul %77, %88, %cst_40 {dimension_numbers = #tpu.dot_dimension_numbers<[1], [0], [0], [1], [0, 0, 1, 1], [], []>} : vector<2x128xf32>, vector<128x512xf32>, vector<2x512xf32> -> vector<2x512xf32>
    %90 = arith.addf %87, %89 : vector<2x512xf32>
    %91 = vector.extract_strided_slice %90 {offsets = [0, 0], sizes = [2, 128], strides = [1, 1]} : vector<2x512xf32> to vector<2x128xf32>
    %92 = arith.negf %91 : vector<2x128xf32>
    %93 = math.exp %92 : vector<2x128xf32>
    %cst_41 = arith.constant 1.000000e+00 : f32
    %94 = vector.broadcast %cst_41 : f32 to vector<2x128xf32>
    %95 = arith.addf %94, %93 : vector<2x128xf32>
    %96 = arith.divf %94, %95 : vector<2x128xf32>
    %97 = vector.extract_strided_slice %90 {offsets = [0, 128], sizes = [2, 128], strides = [1, 1]} : vector<2x512xf32> to vector<2x128xf32>
    %98 = arith.negf %97 : vector<2x128xf32>
    %99 = math.exp %98 : vector<2x128xf32>
    %cst_42 = arith.constant 1.000000e+00 : f32
    %100 = vector.broadcast %cst_42 : f32 to vector<2x128xf32>
    %101 = arith.addf %100, %99 : vector<2x128xf32>
    %102 = arith.divf %100, %101 : vector<2x128xf32>
    %103 = vector.extract_strided_slice %90 {offsets = [0, 256], sizes = [2, 128], strides = [1, 1]} : vector<2x512xf32> to vector<2x128xf32>
    %104 = math.tanh %103 : vector<2x128xf32>
    %105 = vector.extract_strided_slice %90 {offsets = [0, 384], sizes = [2, 128], strides = [1, 1]} : vector<2x512xf32> to vector<2x128xf32>
    %106 = arith.negf %105 : vector<2x128xf32>
    %107 = math.exp %106 : vector<2x128xf32>
    %cst_43 = arith.constant 1.000000e+00 : f32
    %108 = vector.broadcast %cst_43 : f32 to vector<2x128xf32>
    %109 = arith.addf %108, %107 : vector<2x128xf32>
    %110 = arith.divf %108, %109 : vector<2x128xf32>
    %111 = arith.mulf %102, %75 : vector<2x128xf32>
    %112 = arith.mulf %96, %104 : vector<2x128xf32>
    %113 = arith.addf %111, %112 : vector<2x128xf32>
    %114 = math.tanh %113 : vector<2x128xf32>
    %115 = arith.mulf %110, %114 : vector<2x128xf32>
    %c0_44 = arith.constant 0 : index
    %c0_45 = arith.constant 0 : index
    %116 = vector.load %arg3[%c0_44, %c0_45] : memref<128x128xf32, #tpu.memory_space<vmem>>, vector<128x128xf32>
    %cst_46 = arith.constant dense<0.000000e+00> : vector<2x128xf32>
    %117 = tpu.matmul %115, %116, %cst_46 {dimension_numbers = #tpu.dot_dimension_numbers<[1], [0], [0], [1], [0, 0, 1, 1], [], []>} : vector<2x128xf32>, vector<128x128xf32>, vector<2x128xf32> -> vector<2x128xf32>
    %c0_47 = arith.constant 0 : index
    %c0_48 = arith.constant 0 : index
    %118 = vector.load %arg4[%c0_47, %c0_48] : memref<128x128xf32, #tpu.memory_space<vmem>>, vector<128x128xf32>
    %cst_49 = arith.constant dense<0.000000e+00> : vector<2x128xf32>
    %119 = tpu.matmul %84, %118, %cst_49 {dimension_numbers = #tpu.dot_dimension_numbers<[1], [0], [0], [1], [0, 0, 1, 1], [], []>} : vector<2x128xf32>, vector<128x128xf32>, vector<2x128xf32> -> vector<2x128xf32>
    %120 = arith.addf %117, %119 : vector<2x128xf32>
    %121 = arith.addf %120, %5 : vector<2x128xf32>
    %122 = math.tanh %121 : vector<2x128xf32>
    %c3_i32 = arith.constant 3 : i32
    %c2_i32_50 = arith.constant 2 : i32
    %123 = arith.muli %c3_i32, %c2_i32_50 : i32
    %124 = arith.index_cast %123 : i32 to index
    %c0_51 = arith.constant 0 : index
    %125 = vector.load %arg1[%124, %c0_51] : memref<8x512xf32, #tpu.memory_space<vmem>>, vector<2x512xf32>
    %c0_52 = arith.constant 0 : index
    %c0_53 = arith.constant 0 : index
    %126 = vector.load %arg2[%c0_52, %c0_53] : memref<128x512xf32, #tpu.memory_space<vmem>>, vector<128x512xf32>
    %cst_54 = arith.constant dense<0.000000e+00> : vector<2x512xf32>
    %127 = tpu.matmul %115, %126, %cst_54 {dimension_numbers = #tpu.dot_dimension_numbers<[1], [0], [0], [1], [0, 0, 1, 1], [], []>} : vector<2x128xf32>, vector<128x512xf32>, vector<2x512xf32> -> vector<2x512xf32>
    %128 = arith.addf %125, %127 : vector<2x512xf32>
    %129 = vector.extract_strided_slice %128 {offsets = [0, 0], sizes = [2, 128], strides = [1, 1]} : vector<2x512xf32> to vector<2x128xf32>
    %130 = arith.negf %129 : vector<2x128xf32>
    %131 = math.exp %130 : vector<2x128xf32>
    %cst_55 = arith.constant 1.000000e+00 : f32
    %132 = vector.broadcast %cst_55 : f32 to vector<2x128xf32>
    %133 = arith.addf %132, %131 : vector<2x128xf32>
    %134 = arith.divf %132, %133 : vector<2x128xf32>
    %135 = vector.extract_strided_slice %128 {offsets = [0, 128], sizes = [2, 128], strides = [1, 1]} : vector<2x512xf32> to vector<2x128xf32>
    %136 = arith.negf %135 : vector<2x128xf32>
    %137 = math.exp %136 : vector<2x128xf32>
    %cst_56 = arith.constant 1.000000e+00 : f32
    %138 = vector.broadcast %cst_56 : f32 to vector<2x128xf32>
    %139 = arith.addf %138, %137 : vector<2x128xf32>
    %140 = arith.divf %138, %139 : vector<2x128xf32>
    %141 = vector.extract_strided_slice %128 {offsets = [0, 256], sizes = [2, 128], strides = [1, 1]} : vector<2x512xf32> to vector<2x128xf32>
    %142 = math.tanh %141 : vector<2x128xf32>
    %143 = vector.extract_strided_slice %128 {offsets = [0, 384], sizes = [2, 128], strides = [1, 1]} : vector<2x512xf32> to vector<2x128xf32>
    %144 = arith.negf %143 : vector<2x128xf32>
    %145 = math.exp %144 : vector<2x128xf32>
    %cst_57 = arith.constant 1.000000e+00 : f32
    %146 = vector.broadcast %cst_57 : f32 to vector<2x128xf32>
    %147 = arith.addf %146, %145 : vector<2x128xf32>
    %148 = arith.divf %146, %147 : vector<2x128xf32>
    %149 = arith.mulf %140, %113 : vector<2x128xf32>
    %150 = arith.mulf %134, %142 : vector<2x128xf32>
    %151 = arith.addf %149, %150 : vector<2x128xf32>
    %152 = math.tanh %151 : vector<2x128xf32>
    %153 = arith.mulf %148, %152 : vector<2x128xf32>
    %c0_58 = arith.constant 0 : index
    %c0_59 = arith.constant 0 : index
    %154 = vector.load %arg3[%c0_58, %c0_59] : memref<128x128xf32, #tpu.memory_space<vmem>>, vector<128x128xf32>
    %cst_60 = arith.constant dense<0.000000e+00> : vector<2x128xf32>
    %155 = tpu.matmul %153, %154, %cst_60 {dimension_numbers = #tpu.dot_dimension_numbers<[1], [0], [0], [1], [0, 0, 1, 1], [], []>} : vector<2x128xf32>, vector<128x128xf32>, vector<2x128xf32> -> vector<2x128xf32>
    %c0_61 = arith.constant 0 : index
    %c0_62 = arith.constant 0 : index
    %156 = vector.load %arg4[%c0_61, %c0_62] : memref<128x128xf32, #tpu.memory_space<vmem>>, vector<128x128xf32>
    %cst_63 = arith.constant dense<0.000000e+00> : vector<2x128xf32>
    %157 = tpu.matmul %122, %156, %cst_63 {dimension_numbers = #tpu.dot_dimension_numbers<[1], [0], [0], [1], [0, 0, 1, 1], [], []>} : vector<2x128xf32>, vector<128x128xf32>, vector<2x128xf32> -> vector<2x128xf32>
    %158 = arith.addf %155, %157 : vector<2x128xf32>
    %159 = arith.addf %158, %5 : vector<2x128xf32>
    %160 = math.tanh %159 : vector<2x128xf32>
    %c4_i32 = arith.constant 4 : i32
    %c0_64 = arith.constant 0 : index
    %c0_65 = arith.constant 0 : index
    %161 = vector.load %arg7[%c0_64, %c0_65] : memref<2x128xf32, #tpu.memory_space<vmem>>, vector<2x128xf32>
    tpu.vector_store %arg7[%c0_64, %c0_65], %153 {strides = array<i32>} : memref<2x128xf32, #tpu.memory_space<vmem>>, vector<2x128xf32>,
    %c0_66 = arith.constant 0 : index
    %c0_67 = arith.constant 0 : index
    %162 = vector.load %arg8[%c0_66, %c0_67] : memref<2x128xf32, #tpu.memory_space<vmem>>, vector<2x128xf32>
    tpu.vector_store %arg8[%c0_66, %c0_67], %151 {strides = array<i32>} : memref<2x128xf32, #tpu.memory_space<vmem>>, vector<2x128xf32>,
    %c0_68 = arith.constant 0 : index
    %c0_69 = arith.constant 0 : index
    %163 = vector.load %arg9[%c0_68, %c0_69] : memref<2x128xf32, #tpu.memory_space<vmem>>, vector<2x128xf32>
    tpu.vector_store %arg9[%c0_68, %c0_69], %160 {strides = array<i32>} : memref<2x128xf32, #tpu.memory_space<vmem>>, vector<2x128xf32>,
    %c0_70 = arith.constant 0 : index
    %c0_71 = arith.constant 0 : index
    %164 = vector.load %arg6[%c0_70, %c0_71] : memref<2x128xf32, #tpu.memory_space<vmem>>, vector<2x128xf32>
    tpu.vector_store %arg6[%c0_70, %c0_71], %160 {strides = array<i32>} : memref<2x128xf32, #tpu.memory_space<vmem>>, vector<2x128xf32>,
    return
  }
  func.func @transform_0(%arg0: i32) -> (i32, i32) {
    %c0_i32 = arith.constant 0 : i32
    %c0_i32_0 = arith.constant 0 : i32
    return %arg0, %c0_i32 : i32, i32
  }
  func.func @transform_1(%arg0: i32) -> (i32, i32) {
    %c0_i32 = arith.constant 0 : i32
    %c0_i32_0 = arith.constant 0 : i32
    %c0_i32_1 = arith.constant 0 : i32
    return %c0_i32, %c0_i32_0 : i32, i32
  }
  func.func @transform_2(%arg0: i32) -> (i32, i32) {
    %c0_i32 = arith.constant 0 : i32
    %c0_i32_0 = arith.constant 0 : i32
    %c0_i32_1 = arith.constant 0 : i32
    return %c0_i32, %c0_i32_0 : i32, i32
  }
  func.func @transform_3(%arg0: i32) -> (i32, i32) {
    %c0_i32 = arith.constant 0 : i32
    %c0_i32_0 = arith.constant 0 : i32
    %c0_i32_1 = arith.constant 0 : i32
    return %c0_i32, %c0_i32_0 : i32, i32
  }
  func.func @transform_4(%arg0: i32) -> (i32, i32) {
    %c0_i32 = arith.constant 0 : i32
    %c0_i32_0 = arith.constant 0 : i32
    %c0_i32_1 = arith.constant 0 : i32
    return %c0_i32, %c0_i32_0 : i32, i32
  }
  func.func @transform_5(%arg0: i32) -> (i32, i32) {
    %c0_i32 = arith.constant 0 : i32
    %c0_i32_0 = arith.constant 0 : i32
    %c0_i32_1 = arith.constant 0 : i32
    return %c0_i32, %c0_i32_0 : i32, i32
  }
}

</mosaic_0001>

<bundles_post_ra>
// kernel: lstm_rnn_hybrid_forward.1
= control target key start
LH: loop header
LB: loop body
LE: loop exit
PB: predicated region body
PF: predicated region fallthrough
CT: control target
= control target key end

     0   :  { %10 = vsyncpa [#allocation6], 0  ;;  %s2763_s18 = smov 0   ;;  %s3333_s0 = inlined_call_operand.vmem [shape: f32[16,512], index: 0, kind: input, shape index: {}]   ;;  %s3334_s1 = inlined_call_operand.hbm [shape: f32[128,512], index: 1, kind: input, shape index: {}]   ;;  %s3335_s2 = inlined_call_operand.vmem [shape: f32[128,128], index: 2, kind: input, shape index: {}]   ;;  %s3336_s3 = inlined_call_operand.vmem [shape: f32[128,128], index: 3, kind: input, shape index: {}]   ;;  %s3337_s4 = inlined_call_operand.vmem [shape: f32[1,128], index: 4, kind: input, shape index: {}]   ;;  %s3338_s5 = inlined_call_operand.vmem [shape: f32[2,128], index: 5, kind: output, shape index: {}]  }
   0x1 LB: > { %s2769_s19 = sadd.s32 4294967295, %s2724_s18   ;;  %p1701_p0 = scmp.ge.s32.totalorder %s2724_s18, 1  ;;  %s2724_s18 = sphi %s2763_s18, %s16_s18  }
   0x2   : > { %p152_p1 = scmp.lt.s32.totalorder %s2724_s18, 3  ;;  %s2726_s20 = smov [#allocation5]  }
   0x3   : > { %s164_s21 = sshll.u32 %s2726_s20, 4  ;;  %p3339_p4 = scmp.eq.s32.totalorder %s2769_s19, 0  ;;  %s165_s21 = int_to_ptr.vmem [resolvable:$true] %s164_s21 }
   0x4   : > { %p2774_p3 = pnand %p1701_p0, %p152_p1  ;;  %s2686_s26 = scalar_lea.hbm %s3334_s1, 8192 }
   0x5   : > { %p2687_p7 = scmp.ne.s32.totalorder %s3334_s1, %s2686_s26  ;;  %p2693_p11 = scmp.lt.u32.totalorder %s2686_s26, %s3334_s1 }
   0x6   : > { %s3355_s22 = scalar_select %p2774_p3, 1, 0 }
   0x7   : > { %p2593_p5 = pneg %p2774_p3 }
   0x9   : > { %p2783_p6 = pnand %p3339_p4, %p2593_p5 }
   0xb   : > { %p2688_p8 = pneg %p2783_p6 }
   0xd   : > { %p2689_p9 = pnand %p2688_p8, %p2687_p7 }
   0xf   : > { %p2690_p10 = pneg %p2689_p9 }
  0x11   : > { %p2695_p12 = pnand %p2693_p11, %p2690_p10 }
  0x13   : > { %2698 = shalt.err (!%p2695_p12)
}
  0x14   : > { %s2699_s6 = scalar_lea.vmem %s165_s21, 8192  ;;  %p2707_p5 = scmp.lt.s32.totalorder %s165_s21, %s165_s21 }
  0x15   : > { %p2700_p13 = scmp.ne.s32.totalorder %s165_s21, %s2699_s6  ;;  %p2708_p2 = scmp.lt.s32.totalorder %s2699_s6, %s2699_s6 }
  0x17   : > { %p2702_p0 = pnand %p2700_p13, %p2688_p8  ;;  %p2709_p4 = por %p2708_p2, %p2707_p5 }
  0x19   : > { %p2703_p1 = pneg %p2702_p0 }
  0x1b   : > { %p2710_p3 = pnand %p2709_p4, %p2703_p1 }
  0x1d   : > { %2713 = shalt.err (!%p2710_p3)
}
  0x1e   : > { %s2727_s7 = smov 512   ;;  %s2728_s8 = smov 32  }
  0x1f   : > { %2596 = dma.hbm_to_vmem [thread:$0]  (!%p2783_p6), %s3334_s1, 8192, %s165_s21, [#allocation6], %s2727_s7, %s2727_s7, %s2728_s8  }
  0x20   : > { %p3357_p7 = scmp.ne.s32.totalorder %s3355_s22, 0 }
  0x22   : > { %197 = sbr.rel (%p3357_p7) target bundleno = 1413 (0x585), region = 40 }
  0x29   : > { %p3358_p9 = scmp.eq.s32.totalorder %s2769_s19, 0 }
  0x2b   : > { %2719 = dma.done.wait (%p3358_p9), [#allocation6], 8192   ;;  %p3359_p8 = pmov %p3358_p9 }
  0x2c   : > { %p220_p2 = scmp.lt.s32.totalorder %s2769_s19, 1  ;;  %p3360_p3 = scmp.ne.s32.totalorder %s2769_s19, 0 }
  0x2d   : > { %2721 = vsyncadd (%p3359_p8), [#allocation6], 4294959104  ;;  %v2729_v0 = vmov (!%p3360_p3), 0.0  }
  0x2e   : > { %s221_s11 = scalar_select %p220_p2, %s2769_s19, 1 }
  0x2f   : > { %228 = sbr.rel (%p3360_p3) target bundleno = 54 (0x36), region = 48  ;;  %229 = vst [vmem:[#allocation2] sm:$0x3] (!%p3360_p3), %v2729_v0  ;;  %230 = vst [vmem:[#allocation3] sm:$0x3] (!%p3360_p3), %v2729_v0 }
  0x30   : > { %s1724_s12 = sshll.u32 %s221_s11, 5  ;;  %231 = vst [vmem:[#allocation4] sm:$0x3] (!%p3360_p3), %v2729_v0 }
  0x31   : > { %s2814_s15 = scalar_lea.vmem %s3333_s0, %s1724_s12 }
  0x36 PF: > { %v247_v1 = vld [vmem:[#allocation5 + $0x8] sm:$0xff]  ;;  %v246_v3 = vld [vmem:[#allocation5] sm:$0xff]  ;;  %v3341_v8 = vmov 0.0   ;;  %v249_v20 = vld [vmem:[#allocation5 + $0x18] sm:$0xff]  ;;  %vm2732_vm0 = vmmov 0  }
  0x37   : > { %v251_v2 = vld [vmem:[#allocation5 + $0x28] sm:$0xff]  ;;  %v250_v5 = vld [vmem:[#allocation5 + $0x20] sm:$0xff]  ;;  %374 = vmatprep.mubr.f32.mxu0 %v3341_v8  ;;  %445 = vmatprep.mubr.f32.mxu1 %v3341_v8  ;;  %v253_v21 = vld [vmem:[#allocation5 + $0x38] sm:$0xff] }
  0x38   : > { %v2818_v4 = vpack.c.bf16 %v251_v2, %v247_v1  ;;  %v255_v6 = vld [vmem:[#allocation5 + $0x48] sm:$0xff]  ;;  %v2822_v9 = vpack.c.bf16 %v250_v5, %v246_v3  ;;  %v254_v11 = vld [vmem:[#allocation5 + $0x40] sm:$0xff]  ;;  %v2833_v23 = vpack.c.bf16 %v253_v21, %v249_v20  ;;  %v248_v24 = vld [vmem:[#allocation5 + $0x10] sm:$0xff] }
  0x39   : > { %v259_v7 = vld [vmem:[#allocation5 + $0x68] sm:$0xff]  ;;  %v258_v12 = vld [vmem:[#allocation5 + $0x60] sm:$0xff]  ;;  %v252_v25 = vld [vmem:[#allocation5 + $0x30] sm:$0xff] }
  0x3a   : > { %v2824_v10 = vpack.c.bf16 %v259_v7, %v255_v6  ;;  %v263_v13 = vld [vmem:[#allocation5 + $0x88] sm:$0xff]  ;;  %2142 = vmatprep.subr.bf16.mxu0 %v2818_v4  ;;  %v2828_v15 = vpack.c.bf16 %v258_v12, %v254_v11  ;;  %v262_v16 = vld [vmem:[#allocation5 + $0x80] sm:$0xff]  ;;  %3361 = vst [vmem:[#allocation8_spill] sm:$0xff] %v2833_v23  ;;  %v2835_v26 = vpack.c.bf16 %v252_v25, %v248_v24  ;;  %v257_v28 = vld [vmem:[#allocation5 + $0x58] sm:$0xff] }
  0x3b   : > { %v267_v14 = vld [vmem:[#allocation5 + $0xa8] sm:$0xff]  ;;  %2144 = vmatpush1.bf16.msra.mxu0 %v2822_v9  ;;  %v266_v17 = vld [vmem:[#allocation5 + $0xa0] sm:$0xff]  ;;  %2174 = vmatprep.subr.bf16.mxu1 %v2833_v23  ;;  %v261_v29 = vld [vmem:[#allocation5 + $0x78] sm:$0xff] }
  0x3c   : > { %2146 = vmatprep.subr.bf16.mxu0 %v2824_v10  ;;  %v2831_v18 = vpack.c.bf16 %v267_v14, %v263_v13  ;;  %v271_v19 = vld [vmem:[#allocation5 + $0xc8] sm:$0xff]  ;;  %v2838_v27 = vpack.c.bf16 %v266_v17, %v262_v16  ;;  %v256_v30 = vld [vmem:[#allocation5 + $0x50] sm:$0xff]  ;;  %v270_v32 = vld [vmem:[#allocation5 + $0xc0] sm:$0xff]  ;;  %2176 = vmatpush1.bf16.msra.mxu1 %v2835_v26  ;;  %v2845_v34 = vpack.c.bf16 %v261_v29, %v257_v28 }
  0x3d   : > { %v275_v22 = vld [vmem:[#allocation5 + $0xe8] sm:$0xff]  ;;  %v274_v33 = vld [vmem:[#allocation5 + $0xe0] sm:$0xff]  ;;  %v260_v35 = vld [vmem:[#allocation5 + $0x70] sm:$0xff] }
  0x3e   : > { %v2842_v31 = vpack.c.bf16 %v275_v22, %v271_v19  ;;  %v279_v36 = vld [vmem:[#allocation5 + $0x108] sm:$0xff]  ;;  %v2847_v38 = vpack.c.bf16 %v260_v35, %v256_v30  ;;  %v265_v39 = vld [vmem:[#allocation5 + $0x98] sm:$0xff]  ;;  %2178 = vmatprep.subr.bf16.mxu1 %v2845_v34  ;;  %v264_v41 = vld [vmem:[#allocation5 + $0x90] sm:$0xff]  ;;  %v2851_v43 = vpack.c.bf16 %v274_v33, %v270_v32 }
  0x3f   : > { %2148 = vmatpush1.bf16.msra.mxu0 %v2828_v15  ;;  %v283_v37 = vld [vmem:[#allocation5 + $0x128] sm:$0xff]  ;;  %v269_v40 = vld [vmem:[#allocation5 + $0xb8] sm:$0xff]  ;;  %v268_v42 = vld [vmem:[#allocation5 + $0xb0] sm:$0xff] }
  0x40   : > { %2150 = vmatprep.subr.bf16.mxu0 %v2831_v18  ;;  %v278_v44 = vld [vmem:[#allocation5 + $0x100] sm:$0xff]  ;;  %v2853_v46 = vpack.c.bf16 %v269_v40, %v265_v39  ;;  %v2856_v47 = vpack.c.bf16 %v283_v37, %v279_v36  ;;  %2180 = vmatpush1.bf16.msra.mxu1 %v2847_v38  ;;  %v287_v48 = vld [vmem:[#allocation5 + $0x148] sm:$0xff]  ;;  %v2859_v49 = vpack.c.bf16 %v268_v42, %v264_v41  ;;  %v273_v50 = vld [vmem:[#allocation5 + $0xd8] sm:$0xff] }
  0x41   : > { %v282_v45 = vld [vmem:[#allocation5 + $0x120] sm:$0xff]  ;;  %v277_v51 = vld [vmem:[#allocation5 + $0xf8] sm:$0xff]  ;;  %v291_v52 = vld [vmem:[#allocation5 + $0x168] sm:$0xff] }
  0x42   : > { %2182 = vmatprep.subr.bf16.mxu1 %v2853_v46  ;;  %v2862_v53 = vpack.c.bf16 %v277_v51, %v273_v50  ;;  %v272_v54 = vld [vmem:[#allocation5 + $0xd0] sm:$0xff]  ;;  %v2865_v56 = vpack.c.bf16 %v282_v45, %v278_v44  ;;  %v281_v57 = vld [vmem:[#allocation5 + $0x118] sm:$0xff]  ;;  %v2868_v59 = vpack.c.bf16 %v291_v52, %v287_v48  ;;  %v286_v60 = vld [vmem:[#allocation5 + $0x140] sm:$0xff] }
  0x43   : > { %2152 = vmatpush1.bf16.msra.mxu0 %v2838_v27  ;;  %v276_v55 = vld [vmem:[#allocation5 + $0xf0] sm:$0xff]  ;;  %v285_v58 = vld [vmem:[#allocation5 + $0x138] sm:$0xff]  ;;  %v290_v61 = vld [vmem:[#allocation5 + $0x160] sm:$0xff] }
  0x44   : > { %2154 = vmatprep.subr.bf16.mxu0 %v2842_v31  ;;  %2184 = vmatpush1.bf16.msra.mxu1 %v2859_v49  ;;  %v295_v62 = vld [vmem:[#allocation5 + $0x188] sm:$0xff]  ;;  %v2871_v63 = vpack.c.bf16 %v276_v55, %v272_v54  ;;  %v2874_v1 = vpack.c.bf16 %v285_v58, %v281_v57  ;;  %v280_v2 = vld [vmem:[#allocation5 + $0x110] sm:$0xff]  ;;  %v289_v5 = vld [vmem:[#allocation5 + $0x158] sm:$0xff]  ;;  %v2877_v7 = vpack.c.bf16 %v290_v61, %v286_v60  ;;  %v3345_v55 = vmov 0.0|0.0  }
  0x45   : > { %v299_v0 = vld [vmem:[#allocation5 + $0x1a8] sm:$0xff]  ;;  %2186 = vmatprep.subr.bf16.mxu1 %v2862_v53  ;;  %v284_v3 = vld [vmem:[#allocation5 + $0x130] sm:$0xff]  ;;  %v293_v6 = vld [vmem:[#allocation5 + $0x178] sm:$0xff] }
  0x46   : > { %v2880_v11 = vpack.c.bf16 %v299_v0, %v295_v62  ;;  %v294_v12 = vld [vmem:[#allocation5 + $0x180] sm:$0xff]  ;;  %v303_v14 = vld [vmem:[#allocation5 + $0x1c8] sm:$0xff]  ;;  %v2883_v16 = vpack.c.bf16 %v284_v3, %v280_v2  ;;  %v2886_v19 = vpack.c.bf16 %v293_v6, %v289_v5  ;;  %v288_v20 = vld [vmem:[#allocation5 + $0x150] sm:$0xff] }
  0x47   : > { %2156 = vmatpush1.bf16.msra.mxu0 %v2851_v43  ;;  %v298_v13 = vld [vmem:[#allocation5 + $0x1a0] sm:$0xff]  ;;  %v307_v17 = vld [vmem:[#allocation5 + $0x1e8] sm:$0xff]  ;;  %v292_v21 = vld [vmem:[#allocation5 + $0x170] sm:$0xff] }
  0x48   : > { %2158 = vmatprep.subr.bf16.mxu0 %v2856_v47  ;;  %2188 = vmatpush1.bf16.msra.mxu1 %v2871_v63  ;;  %v297_v22 = vld [vmem:[#allocation5 + $0x198] sm:$0xff]  ;;  %v2889_v25 = vpack.c.bf16 %v298_v13, %v294_v12  ;;  %v2892_v28 = vpack.c.bf16 %v307_v17, %v303_v14  ;;  %v302_v29 = vld [vmem:[#allocation5 + $0x1c0] sm:$0xff]  ;;  %v2895_v32 = vpack.c.bf16 %v292_v21, %v288_v20  ;;  %v296_v35 = vld [vmem:[#allocation5 + $0x190] sm:$0xff] }
  0x49   : > { %2190 = vmatprep.subr.bf16.mxu1 %v2874_v1  ;;  %v301_v24 = vld [vmem:[#allocation5 + $0x1b8] sm:$0xff]  ;;  %v306_v30 = vld [vmem:[#allocation5 + $0x1e0] sm:$0xff]  ;;  %v300_v36 = vld [vmem:[#allocation5 + $0x1b0] sm:$0xff] }
  0x4a   : > { %3362 = vst [vmem:[#allocation9_spill] sm:$0xff] %v2889_v25  ;;  %3363 = vst [vmem:[#allocation10_spill] sm:$0xff] %v2892_v28  ;;  %v2898_v33 = vpack.c.bf16 %v301_v24, %v297_v22  ;;  %v305_v37 = vld [vmem:[#allocation5 + $0x1d8] sm:$0xff]  ;;  %v2901_v40 = vpack.c.bf16 %v306_v30, %v302_v29  ;;  %v2905_v41 = vpack.c.bf16 %v300_v36, %v296_v35  ;;  %v497_v44 = vld [vmem:[%s3336_s3 + $0x8] sm:$0xff] }
  0x4b   : > { %2160 = vmatpush1.bf16.msra.mxu0 %v2865_v56  ;;  %v309_v39 = vld [vmem:[#allocation5 + $0x1f8] sm:$0xff]  ;;  %v304_v48 = vld [vmem:[#allocation5 + $0x1d0] sm:$0xff]  ;;  %v501_v62 = vld [vmem:[%s3336_s3 + $0x28] sm:$0xff] }
  0x4c   : > { %2162 = vmatprep.subr.bf16.mxu0 %v2868_v59  ;;  %2192 = vmatpush1.bf16.msra.mxu1 %v2883_v16  ;;  %3364 = vst [vmem:[#allocation11_spill] sm:$0xff] %v2901_v40  ;;  %v496_v42 = vld [vmem:[%s3336_s3] sm:$0xff]  ;;  %v2914_v45 = vpack.c.bf16 %v309_v39, %v305_v37  ;;  %v308_v50 = vld [vmem:[#allocation5 + $0x1f0] sm:$0xff]  ;;  %v505_v12 = vld [vmem:[%s3336_s3 + $0x48] sm:$0xff] }
  0x4d   : > { %2194 = vmatprep.subr.bf16.mxu1 %v2886_v19  ;;  %v239_v51 = vld [vmem:[#allocation2] sm:$0x3]  ;;  %v2917_v52 = vpack.c.bf16 %v497_v44, %v496_v42  ;;  %v2920_v54 = vpack.c.bf16 %v308_v50, %v304_v48  ;;  %v498_v57 = vld [vmem:[%s3336_s3 + $0x10] sm:$0xff]  ;;  %v499_v58 = vld [vmem:[%s3336_s3 + $0x18] sm:$0xff] }
  0x4e   : > { %v2931_v60 = vpack.c.bf16 %v499_v58, %v498_v57  ;;  %v500_v61 = vld [vmem:[%s3336_s3 + $0x20] sm:$0xff]  ;;  %v502_v2 = vld [vmem:[%s3336_s3 + $0x30] sm:$0xff]  ;;  %v503_v3 = vld [vmem:[%s3336_s3 + $0x38] sm:$0xff] }
  0x4f   : > { %2164 = vmatpush1.bf16.msra.mxu0 %v2877_v7  ;;  %v2943_v0 = vpack.c.bf16 %v501_v62, %v500_v61  ;;  %v2953_v5 = vpack.c.bf16 %v503_v3, %v502_v2  ;;  %v504_v6 = vld [vmem:[%s3336_s3 + $0x40] sm:$0xff]  ;;  %v506_v14 = vld [vmem:[%s3336_s3 + $0x50] sm:$0xff]  ;;  %v507_v17 = vld [vmem:[%s3336_s3 + $0x58] sm:$0xff] }
  0x50   : > { %2166 = vmatprep.subr.bf16.mxu0 %v2880_v11  ;;  %2196 = vmatpush1.bf16.msra.mxu1 %v2895_v32  ;;  %v2964_v13 = vpack.c.bf16 %v505_v12, %v504_v6  ;;  %v2974_v20 = vpack.c.bf16 %v507_v17, %v506_v14  ;;  %v508_v21 = vld [vmem:[%s3336_s3 + $0x60] sm:$0xff]  ;;  %v509_v22 = vld [vmem:[%s3336_s3 + $0x68] sm:$0xff]  ;;  %v510_v29 = vld [vmem:[%s3336_s3 + $0x70] sm:$0xff] }
  0x51   : > { %2198 = vmatprep.subr.bf16.mxu1 %v2898_v33  ;;  %v2984_v24 = vpack.c.bf16 %v509_v22, %v508_v21  ;;  %v511_v30 = vld [vmem:[%s3336_s3 + $0x78] sm:$0xff]  ;;  %v480_v36 = vld [vmem:[%s3335_s2] sm:$0xff]  ;;  %v481_v37 = vld [vmem:[%s3335_s2 + $0x8] sm:$0xff] }
  0x52   : > { %v2994_v35 = vpack.c.bf16 %v511_v30, %v510_v29  ;;  %v3003_v39 = vpack.c.bf16 %v481_v37, %v480_v36  ;;  %v241_v42 = vld [vmem:[#allocation4] sm:$0x3]  ;;  %v482_v44 = vld [vmem:[%s3335_s2 + $0x10] sm:$0xff]  ;;  %v483_v48 = vld [vmem:[%s3335_s2 + $0x18] sm:$0xff] }
  0x53   : > { %2168 = vmatpush1.bf16.msra.mxu0 %v2889_v25  ;;  %v3017_v50 = vpack.c.bf16 %v483_v48, %v482_v44  ;;  %v485_v57 = vld [vmem:[%s3335_s2 + $0x28] sm:$0xff]  ;;  %v486_v61 = vld [vmem:[%s3335_s2 + $0x30] sm:$0xff]  ;;  %v487_v62 = vld [vmem:[%s3335_s2 + $0x38] sm:$0xff] }
  0x54   : > { %2170 = vmatprep.subr.bf16.mxu0 %v2892_v28  ;;  %2200 = vmatpush1.bf16.msra.mxu1 %v2905_v41  ;;  %v3044_v2 = vpack.c.bf16 %v487_v62, %v486_v61  ;;  %v488_v3 = vld [vmem:[%s3335_s2 + $0x40] sm:$0xff]  ;;  %v489_v6 = vld [vmem:[%s3335_s2 + $0x48] sm:$0xff]  ;;  %v490_v14 = vld [vmem:[%s3335_s2 + $0x50] sm:$0xff] }
  0x55   : > { %2202 = vmatprep.subr.bf16.mxu1 %v2914_v45  ;;  %v3056_v12 = vpack.c.bf16 %v489_v6, %v488_v3  ;;  %v491_v17 = vld [vmem:[%s3335_s2 + $0x58] sm:$0xff]  ;;  %v492_v22 = vld [vmem:[%s3335_s2 + $0x60] sm:$0xff]  ;;  %v493_v29 = vld [vmem:[%s3335_s2 + $0x68] sm:$0xff] }
  0x56   : > { %v3068_v21 = vpack.c.bf16 %v491_v17, %v490_v14  ;;  %v3078_v30 = vpack.c.bf16 %v493_v29, %v492_v22  ;;  %v494_v36 = vld [vmem:[%s3335_s2 + $0x70] sm:$0xff]  ;;  %v495_v37 = vld [vmem:[%s3335_s2 + $0x78] sm:$0xff]  ;;  %v242_v44 = vld [vmem:[%s2814_s15] sm:$0x3] }
  0x57   : > { %2172 = vmatpush1.bf16.msra.mxu0 %v2901_v40  ;;  %v243_v48 = vld [vmem:[%s2814_s15 + $0x8] sm:$0x3]  ;;  %v245_v14 = vld [vmem:[%s2814_s15 + $0x18] sm:$0x3] }
  0x58   : > { %2205 = vmatprep.subr.bf16.mxu0 %v3345_v55  ;;  %2204 = vmatpush1.bf16.msra.mxu1 %v2920_v54  ;;  %3365 = vst [vmem:[#allocation12_spill] sm:$0xff] %v3068_v21  ;;  %3366 = vst [vmem:[#allocation13_spill] sm:$0xff] %v3078_v30 }
  0x59   : > { %2229 = vmatprep.subr.bf16.mxu1 %v3345_v55 }
  0x5a   : > { %375 = vmatmul.mubr.f32.vlgmr.msra.gmra.mrb[0].mxu0 %v239_v51 }
  0x5b   : > { %2207 = vmatpush3.bf16.msra.mxu0 %v2917_v52  ;;  %446 = vmatmul.mubr.f32.vlgmr.msra.gmra.mrb[0].mxu1 %v239_v51  ;;  %v484_v51 = vld [vmem:[%s3335_s2 + $0x20] sm:$0xff] }
  0x5c   : > { %2208 = vmatprep.subr.bf16.mxu0 %v3345_v55  ;;  %1893 = vmatprep.mubr.msk.f32.mxu0 %vm2732_vm0, %v3341_v8  ;;  %v3032_v58 = vpack.c.bf16 %v485_v57, %v484_v51 }
  0x5d   : > { %2231 = vmatpush3.bf16.msra.mxu1 %v3003_v39  ;;  %1928 = vmatprep.mubr.msk.f32.mxu1 %vm2732_vm0, %v3341_v8 }
  0x5e   : > { %2232 = vmatprep.subr.bf16.mxu1 %v3345_v55 }
  0x5f   : > { %2210 = vmatpush3.bf16.msra.mxu0 %v2931_v60 }
  0x60   : > { %2211 = vmatprep.subr.bf16.mxu0 %v3345_v55 }
  0x61   : > { %2234 = vmatpush3.bf16.msra.mxu1 %v3017_v50 }
  0x62   : > { %2235 = vmatprep.subr.bf16.mxu1 %v3345_v55 }
  0x63   : > { %2213 = vmatpush3.bf16.msra.mxu0 %v2943_v0 }
  0x64   : > { %2214 = vmatprep.subr.bf16.mxu0 %v3345_v55 }
  0x65   : > { %2237 = vmatpush3.bf16.msra.mxu1 %v3032_v58 }
  0x66   : > { %2238 = vmatprep.subr.bf16.mxu1 %v3345_v55 }
  0x67   : > { %2216 = vmatpush3.bf16.msra.mxu0 %v2953_v5 }
  0x68   : > { %2217 = vmatprep.subr.bf16.mxu0 %v3345_v55 }
  0x69   : > { %2240 = vmatpush3.bf16.msra.mxu1 %v3044_v2 }
  0x6a   : > { %2241 = vmatprep.subr.bf16.mxu1 %v3345_v55 }
  0x6b   : > { %2219 = vmatpush3.bf16.msra.mxu0 %v2964_v13 }
  0x6c   : > { %2220 = vmatprep.subr.bf16.mxu0 %v3345_v55 }
  0x6d   : > { %2243 = vmatpush3.bf16.msra.mxu1 %v3056_v12 }
  0x6e   : > { %2244 = vmatprep.subr.bf16.mxu1 %v3345_v55 }
  0x6f   : > { %2222 = vmatpush3.bf16.msra.mxu0 %v2974_v20 }
  0x70   : > { %2223 = vmatprep.subr.bf16.mxu0 %v3345_v55 }
  0x71   : > { %2246 = vmatpush3.bf16.msra.mxu1 %v3068_v21 }
  0x72   : > { %2247 = vmatprep.subr.bf16.mxu1 %v3345_v55 }
  0x73   : > { %2225 = vmatpush3.bf16.msra.mxu0 %v2984_v24 }
  0x74   : > { %2226 = vmatprep.subr.bf16.mxu0 %v3345_v55 }
  0x75   : > { %2249 = vmatpush3.bf16.msra.mxu1 %v3078_v30 }
  0x76   : > { %2250 = vmatprep.subr.bf16.mxu1 %v3345_v55 }
  0x77   : > { %2228 = vmatpush3.bf16.msra.mxu0 %v2994_v35 }
  0x78   : > { %2254 = vmatprep.subr.bf16.mxu0 %v2818_v4 }
  0x7a   : > { %1894 = vmatmul.mubr.f32.vlgmr.msra.gmra.mrb[2].mxu0 %v241_v42  ;;  %v3090_v42 = vpack.c.bf16 %v495_v37, %v494_v36  ;;  %v244_v36 = vld [vmem:[%s2814_s15 + $0x10] sm:$0x3] }
  0x7b   : > { %2256 = vmatpush1.bf16.msra.mxu0 %v2822_v9  ;;  %722 = vmatprep.mubr.f32.mxu0 %v3341_v8 }
  0x7c   : > { %2258 = vmatprep.subr.bf16.mxu0 %v2824_v10  ;;  %3367 = vst [vmem:[#allocation14_spill] sm:$0xff] %v3090_v42  ;;  %2252 = vmatpush3.bf16.msra.mxu1 %v3090_v42 }
  0x7d   : > { %2286 = vmatprep.subr.bf16.mxu1 %v2833_v23 }
  0x7f   : > { %2260 = vmatpush1.bf16.msra.mxu0 %v2828_v15 }
  0x80   : > { %2262 = vmatprep.subr.bf16.mxu0 %v2831_v18 }
  0x83   : > { %2264 = vmatpush1.bf16.msra.mxu0 %v2838_v27 }
  0x84   : > { %2266 = vmatprep.subr.bf16.mxu0 %v2842_v31 }
  0x87   : > { %2268 = vmatpush1.bf16.msra.mxu0 %v2851_v43 }
  0x88   : > { %2270 = vmatprep.subr.bf16.mxu0 %v2856_v47 }
  0x8b   : > { %2272 = vmatpush1.bf16.msra.mxu0 %v2865_v56 }
  0x8c   : > { %2274 = vmatprep.subr.bf16.mxu0 %v2868_v59 }
  0x8f   : > { %2276 = vmatpush1.bf16.msra.mxu0 %v2877_v7 }
  0x90   : > { %2278 = vmatprep.subr.bf16.mxu0 %v2880_v11 }
  0x93   : > { %2280 = vmatpush1.bf16.msra.mxu0 %v2889_v25 }
  0x94   : > { %2282 = vmatprep.subr.bf16.mxu0 %v2892_v28 }
  0x97   : > { %2284 = vmatpush1.bf16.msra.mxu0 %v2901_v40 }
  0x98   : > { %2317 = vmatprep.subr.bf16.mxu0 %v3345_v55 }
 0x12d   : > { %v376_v51 = vpop.f32.mrb[0].mxu0 }
 0x12e   : > { %v452_v57 = vadd.f32 %v376_v51, %v242_v44  ;;  %v378_v61 = vpop.f32.mrb[1].mxu0  ;;  %v447_v17 = vpop.f32.mrb[0].mxu1  ;;  %v240_v51 = vld [vmem:[#allocation3] sm:$0x3] }
 0x12f   : > { %v453_v62 = vadd.f32 %v378_v61, %v243_v48  ;;  %v449_v22 = vpop.f32.mrb[1].mxu1  ;;  %v454_v8 = vadd.f32 %v447_v17, %v244_v36 }
 0x130   : > { %v1710_v3 = vmul.f32 -1.442695, %v452_v57  ;;  %v455_v29 = vadd.f32 %v449_v22, %v245_v14 }
 0x131   : > { %v1711_v6 = vmul.f32 -1.442695, %v453_v62 }
 0x132   : > { %2614 = vpow2.f32 %v1710_v3  ;;  %v1712_v37 = vmul.f32 -1.442695, %v455_v29  ;;  %v3162_v29 = vld [vmem:[%s3337_s4] ss:$0 sm:$0xff] }
 0x133   : > { %2616 = vpow2.f32 %v1711_v6 }
 0x134   : > { %2618 = vpow2.f32 %v1712_v37 }
 0x135   : > { %2620 = vtanh.f32 %v454_v8  ;;  %v3368_v8 = vmov 0.0  }
 0x13c   : > { %v2615_v40 = vpop.eup %2614 }
 0x13d   : > { %v2617_v55 = vpop.eup %2616  ;;  %v459_v28 = vadd.f32 1.0, %v2615_v40 }
 0x13e   : > { %v465_v25 = vadd.f32 1.0, %v2617_v55  ;;  %v2619_v44 = vpop.eup %2618 }
 0x13f   : > { %2622 = vrcp.f32 %v459_v28  ;;  %v2621_v48 = vpop.eup %2620  ;;  %v472_v61 = vadd.f32 1.0, %v2619_v44 }
 0x140   : > { %2624 = vrcp.f32 %v465_v25  ;;  %v3369_v25 = vmov 0.0|0.0  }
 0x141   : > { %2626 = vrcp.f32 %v472_v61 }
 0x149   : > { %v2623_v57 = vpop.eup %2622 }
 0x14a   : > { %v2625_v62 = vpop.eup %2624  ;;  %v476_v3 = vmul.f32 %v2623_v57, %v2621_v48 }
 0x14b   : > { %v475_v6 = vmul.f32 %v2625_v62, %v240_v51  ;;  %v2627_v17 = vpop.eup %2626  ;;  %v655_v51 = vld [vmem:[%s2814_s15 + $0x8] sm:$0xc] }
 0x14d   : > { %v3103_v14 = vadd.f32 %v476_v3, %v475_v6  ;;  %v578_v28 = vpop.f32.mrb[2].mxu0 }
 0x14e   : > { %v1895_v55 = vpop.f32.mrb[3].mxu0 }
 0x14f   : > { %2628 = vtanh.f32 %v3103_v14 }
 0x159   : > { %v2629_v22 = vpop.eup %2628 }
 0x15a   : > { %v479_v40 = vmul.f32 %v2629_v22, %v2627_v17  ;;  %v654_v22 = vld [vmem:[%s2814_s15] sm:$0xc] }
 0x15c   : > { %1929 = vmatmul.mubr.f32.vlgmr.msra.gmra.mrb[2].mxu1 %v479_v40  ;;  %723 = vmatmul.mubr.f32.vlgmr.msra.gmra.mrb[4].mxu0 %v479_v40 }
 0x15d   : > { %2288 = vmatpush1.bf16.msra.mxu1 %v2835_v26  ;;  %793 = vmatprep.mubr.f32.mxu1 %v3368_v8 }
 0x15e   : > { %2290 = vmatprep.subr.bf16.mxu1 %v2845_v34  ;;  %2319 = vmatpush3.bf16.msra.mxu0 %v2917_v52 }
 0x15f   : > { %2320 = vmatprep.subr.bf16.mxu0 %v3369_v25  ;;  %1963 = vmatprep.mubr.msk.f32.mxu0 %vm2732_vm0, %v3368_v8 }
 0x161   : > { %2292 = vmatpush1.bf16.msra.mxu1 %v2847_v38 }
 0x162   : > { %2294 = vmatprep.subr.bf16.mxu1 %v2853_v46  ;;  %2322 = vmatpush3.bf16.msra.mxu0 %v2931_v60 }
 0x163   : > { %2323 = vmatprep.subr.bf16.mxu0 %v3369_v25 }
 0x165   : > { %2296 = vmatpush1.bf16.msra.mxu1 %v2859_v49 }
 0x166   : > { %2298 = vmatprep.subr.bf16.mxu1 %v2862_v53  ;;  %2325 = vmatpush3.bf16.msra.mxu0 %v2943_v0 }
 0x167   : > { %2326 = vmatprep.subr.bf16.mxu0 %v3369_v25 }
 0x169   : > { %2300 = vmatpush1.bf16.msra.mxu1 %v2871_v63 }
 0x16a   : > { %2302 = vmatprep.subr.bf16.mxu1 %v2874_v1  ;;  %2328 = vmatpush3.bf16.msra.mxu0 %v2953_v5 }
 0x16b   : > { %2329 = vmatprep.subr.bf16.mxu0 %v3369_v25 }
 0x16d   : > { %2304 = vmatpush1.bf16.msra.mxu1 %v2883_v16 }
 0x16e   : > { %2306 = vmatprep.subr.bf16.mxu1 %v2886_v19  ;;  %2331 = vmatpush3.bf16.msra.mxu0 %v2964_v13 }
 0x16f   : > { %2332 = vmatprep.subr.bf16.mxu0 %v3369_v25 }
 0x171   : > { %2308 = vmatpush1.bf16.msra.mxu1 %v2895_v32 }
 0x172   : > { %2310 = vmatprep.subr.bf16.mxu1 %v2898_v33  ;;  %2334 = vmatpush3.bf16.msra.mxu0 %v2974_v20 }
 0x173   : > { %2335 = vmatprep.subr.bf16.mxu0 %v3369_v25 }
 0x175   : > { %2312 = vmatpush1.bf16.msra.mxu1 %v2905_v41 }
 0x176   : > { %2314 = vmatprep.subr.bf16.mxu1 %v2914_v45  ;;  %2337 = vmatpush3.bf16.msra.mxu0 %v2984_v24 }
 0x177   : > { %2338 = vmatprep.subr.bf16.mxu0 %v3369_v25 }
 0x179   : > { %2316 = vmatpush1.bf16.msra.mxu1 %v2920_v54 }
 0x17a   : > { %2340 = vmatpush3.bf16.msra.mxu0 %v2994_v35  ;;  %2341 = vmatprep.subr.bf16.mxu1 %v3369_v25 }
 0x17b   : > { %2366 = vmatprep.subr.bf16.mxu0 %v2818_v4 }
 0x17c   : > { %794 = vmatmul.mubr.f32.vlgmr.msra.gmra.mrb[4].mxu1 %v479_v40 }
 0x17d   : > { %2343 = vmatpush3.bf16.msra.mxu1 %v3003_v39  ;;  %1998 = vmatprep.mubr.msk.f32.mxu1 %vm2732_vm0, %v3368_v8 }
 0x17e   : > { %2344 = vmatprep.subr.bf16.mxu1 %v3369_v25 }
 0x181   : > { %2346 = vmatpush3.bf16.msra.mxu1 %v3017_v50 }
 0x182   : > { %2347 = vmatprep.subr.bf16.mxu1 %v3369_v25 }
 0x185   : > { %2349 = vmatpush3.bf16.msra.mxu1 %v3032_v58 }
 0x186   : > { %2350 = vmatprep.subr.bf16.mxu1 %v3369_v25 }
 0x189   : > { %2352 = vmatpush3.bf16.msra.mxu1 %v3044_v2 }
 0x18a   : > { %2353 = vmatprep.subr.bf16.mxu1 %v3369_v25 }
 0x18d   : > { %2355 = vmatpush3.bf16.msra.mxu1 %v3056_v12 }
 0x18e   : > { %2356 = vmatprep.subr.bf16.mxu1 %v3369_v25 }
 0x191   : > { %2358 = vmatpush3.bf16.msra.mxu1 %v3068_v21 }
 0x192   : > { %2359 = vmatprep.subr.bf16.mxu1 %v3369_v25 }
 0x195   : > { %2361 = vmatpush3.bf16.msra.mxu1 %v3078_v30 }
 0x196   : > { %2362 = vmatprep.subr.bf16.mxu1 %v3369_v25 }
 0x199   : > { %2364 = vmatpush3.bf16.msra.mxu1 %v3090_v42 }
 0x19a   : > { %2398 = vmatprep.subr.bf16.mxu1 %v2833_v23 }
 0x22f   : > { %v648_v36 = vpop.f32.mrb[2].mxu1  ;;  %v724_v37 = vpop.f32.mrb[4].mxu0 }
 0x230   : > { %v649_v44 = vadd.f32 %v648_v36, %v578_v28  ;;  %v1930_v48 = vpop.f32.mrb[3].mxu1  ;;  %v726_v57 = vpop.f32.mrb[5].mxu0  ;;  %v804_v17 = vrot.slane %v724_v37, 6 }
 0x231   : > { %v805_v61 = vrot.slane %v726_v57, 6  ;;  %v656_v57 = vld [vmem:[%s2814_s15 + $0x10] sm:$0xc] }
 0x232   : > { %v652_v62 = vadd.f32 %v3162_v29, %v649_v44  ;;  %v812_v40 = vadd.f32 %v804_v17, %v654_v22  ;;  %v836_v44 = vrot.slane %v3103_v14, 6 }
 0x233   : > { %v813_v3 = vadd.f32 %v805_v61, %v655_v51 }
 0x234   : > { %2630 = vtanh.f32 %v652_v62  ;;  %v1713_v23 = vmul.f32 -1.442695, %v812_v40 }
 0x235   : > { %v1714_v6 = vmul.f32 -1.442695, %v813_v3  ;;  %v657_v3 = vld [vmem:[%s2814_s15 + $0x18] sm:$0xc] }
 0x237   : > { %2632 = vpow2.f32 %v1714_v6 }
 0x238   : > { %2634 = vpow2.f32 %v1713_v23 }
 0x23e   : > { %v2631_v55 = vpop.eup %2630 }
 0x23f   : > { %1964 = vmatmul.mubr.f32.vlgmr.msra.gmra.mrb[6].mxu0 %v2631_v55  ;;  %v3370_v55 = vld [vmem:[#allocation9_spill] sm:$0xff] }
 0x240   : > { %2368 = vmatpush1.bf16.msra.mxu0 %v2822_v9  ;;  %1056 = vmatprep.mubr.f32.mxu0 %v3368_v8 }
 0x241   : > { %v2633_v28 = vpop.eup %2632  ;;  %2370 = vmatprep.subr.bf16.mxu0 %v2824_v10 }
 0x242   : > { %v825_v36 = vadd.f32 1.0, %v2633_v28  ;;  %v2635_v37 = vpop.eup %2634  ;;  %v3371_v28 = vld [vmem:[#allocation10_spill] sm:$0xff] }
 0x243   : > { %v819_v23 = vadd.f32 1.0, %v2635_v37 }
 0x244   : > { %2636 = vrcp.f32 %v825_v36  ;;  %2372 = vmatpush1.bf16.msra.mxu0 %v2828_v15  ;;  %v3372_v36 = vld [vmem:[#allocation11_spill] sm:$0xff] }
 0x245   : > { %2374 = vmatprep.subr.bf16.mxu0 %v2831_v18  ;;  %2638 = vrcp.f32 %v819_v23 }
 0x248   : > { %2376 = vmatpush1.bf16.msra.mxu0 %v2838_v27 }
 0x249   : > { %2378 = vmatprep.subr.bf16.mxu0 %v2842_v31 }
 0x24c   : > { %2380 = vmatpush1.bf16.msra.mxu0 %v2851_v43 }
 0x24d   : > { %2382 = vmatprep.subr.bf16.mxu0 %v2856_v47 }
 0x24e   : > { %v2637_v48 = vpop.eup %2636 }
 0x24f   : > { %v838_v51 = vmul.f32 %v2637_v48, %v836_v44  ;;  %v795_v61 = vpop.f32.mrb[4].mxu1  ;;  %v2639_v37 = vpop.eup %2638 }
 0x250   : > { %v806_v62 = vrot.slane %v795_v61, 6  ;;  %v797_v6 = vpop.f32.mrb[5].mxu1  ;;  %2384 = vmatpush1.bf16.msra.mxu0 %v2865_v56 }
 0x251   : > { %v807_v17 = vrot.slane %v797_v6, 6  ;;  %2386 = vmatprep.subr.bf16.mxu0 %v2868_v59 }
 0x252   : > { %v814_v22 = vadd.f32 %v806_v62, %v656_v57 }
 0x253   : > { %v815_v40 = vadd.f32 %v807_v17, %v657_v3 }
 0x254   : > { %2640 = vtanh.f32 %v814_v22  ;;  %2388 = vmatpush1.bf16.msra.mxu0 %v2877_v7 }
 0x255   : > { %v1715_v14 = vmul.f32 -1.442695, %v815_v40  ;;  %2390 = vmatprep.subr.bf16.mxu0 %v2880_v11 }
 0x257   : > { %2642 = vpow2.f32 %v1715_v14 }
 0x258   : > { %2392 = vmatpush1.bf16.msra.mxu0 %v3370_v55 }
 0x259   : > { %2394 = vmatprep.subr.bf16.mxu0 %v3371_v28 }
 0x25c   : > { %2396 = vmatpush1.bf16.msra.mxu0 %v3372_v36 }
 0x25d   : > { %2429 = vmatprep.subr.bf16.mxu0 %v3369_v25 }
 0x25e   : > { %v2641_v44 = vpop.eup %2640 }
 0x25f   : > { %v839_v48 = vmul.f32 %v2641_v44, %v2639_v37 }
 0x261   : > { %v2643_v23 = vpop.eup %2642  ;;  %v3187_v57 = vadd.f32 %v839_v48, %v838_v51  ;;  %v989_v48 = vld [vmem:[%s2814_s15 + $0x8] sm:$0x30] }
 0x262   : > { %v832_v61 = vadd.f32 1.0, %v2643_v23 }
 0x263   : > { %2644 = vtanh.f32 %v3187_v57 }
 0x264   : > { %2646 = vrcp.f32 %v832_v61 }
 0x26d   : > { %v2645_v62 = vpop.eup %2644 }
 0x26e   : > { %v2647_v3 = vpop.eup %2646 }
 0x26f   : > { %v842_v6 = vmul.f32 %v2647_v3, %v2645_v62 }
 0x271   : > { %v914_v17 = vrot.slane %v842_v6, 2 }
 0x273   : > { %1999 = vmatmul.mubr.f32.vlgmr.msra.gmra.mrb[6].mxu1 %v914_v17  ;;  %1057 = vmatmul.mubr.f32.vlgmr.msra.gmra.mrb[8].mxu0 %v914_v17 }
 0x274   : > { %2400 = vmatpush1.bf16.msra.mxu1 %v2835_v26  ;;  %1127 = vmatprep.mubr.f32.mxu1 %v3368_v8 }
 0x275   : > { %2402 = vmatprep.subr.bf16.mxu1 %v2845_v34  ;;  %2431 = vmatpush3.bf16.msra.mxu0 %v2917_v52 }
 0x276   : > { %2432 = vmatprep.subr.bf16.mxu0 %v3369_v25  ;;  %2033 = vmatprep.mubr.msk.f32.mxu0 %vm2732_vm0, %v3368_v8 }
 0x278   : > { %2404 = vmatpush1.bf16.msra.mxu1 %v2847_v38 }
 0x279   : > { %2406 = vmatprep.subr.bf16.mxu1 %v2853_v46  ;;  %2434 = vmatpush3.bf16.msra.mxu0 %v2931_v60 }
 0x27a   : > { %2435 = vmatprep.subr.bf16.mxu0 %v3369_v25 }
 0x27c   : > { %2408 = vmatpush1.bf16.msra.mxu1 %v2859_v49 }
 0x27d   : > { %2410 = vmatprep.subr.bf16.mxu1 %v2862_v53  ;;  %2437 = vmatpush3.bf16.msra.mxu0 %v2943_v0 }
 0x27e   : > { %2438 = vmatprep.subr.bf16.mxu0 %v3369_v25 }
 0x280   : > { %2412 = vmatpush1.bf16.msra.mxu1 %v2871_v63 }
 0x281   : > { %2414 = vmatprep.subr.bf16.mxu1 %v2874_v1  ;;  %2440 = vmatpush3.bf16.msra.mxu0 %v2953_v5 }
 0x282   : > { %2441 = vmatprep.subr.bf16.mxu0 %v3369_v25 }
 0x284   : > { %2416 = vmatpush1.bf16.msra.mxu1 %v2883_v16 }
 0x285   : > { %2418 = vmatprep.subr.bf16.mxu1 %v2886_v19  ;;  %2443 = vmatpush3.bf16.msra.mxu0 %v2964_v13 }
 0x286   : > { %2444 = vmatprep.subr.bf16.mxu0 %v3369_v25 }
 0x288   : > { %2420 = vmatpush1.bf16.msra.mxu1 %v2895_v32 }
 0x289   : > { %2422 = vmatprep.subr.bf16.mxu1 %v2898_v33  ;;  %2446 = vmatpush3.bf16.msra.mxu0 %v2974_v20 }
 0x28a   : > { %2447 = vmatprep.subr.bf16.mxu0 %v3369_v25 }
 0x28c   : > { %2424 = vmatpush1.bf16.msra.mxu1 %v2905_v41 }
 0x28d   : > { %2426 = vmatprep.subr.bf16.mxu1 %v2914_v45  ;;  %2449 = vmatpush3.bf16.msra.mxu0 %v2984_v24 }
 0x28e   : > { %2450 = vmatprep.subr.bf16.mxu0 %v3369_v25 }
 0x290   : > { %2428 = vmatpush1.bf16.msra.mxu1 %v2920_v54 }
 0x291   : > { %2452 = vmatpush3.bf16.msra.mxu0 %v2994_v35  ;;  %2453 = vmatprep.subr.bf16.mxu1 %v3369_v25 }
 0x292   : > { %2478 = vmatprep.subr.bf16.mxu0 %v2818_v4  ;;  %v3373_v4 = vld [vmem:[#allocation8_spill] sm:$0xff] }
 0x293   : > { %1128 = vmatmul.mubr.f32.vlgmr.msra.gmra.mrb[8].mxu1 %v914_v17 }
 0x294   : > { %2455 = vmatpush3.bf16.msra.mxu1 %v3003_v39  ;;  %2068 = vmatprep.mubr.msk.f32.mxu1 %vm2732_vm0, %v3368_v8 }
 0x295   : > { %2456 = vmatprep.subr.bf16.mxu1 %v3369_v25 }
 0x298   : > { %2458 = vmatpush3.bf16.msra.mxu1 %v3017_v50 }
 0x299   : > { %2459 = vmatprep.subr.bf16.mxu1 %v3369_v25 }
 0x29c   : > { %2461 = vmatpush3.bf16.msra.mxu1 %v3032_v58 }
 0x29d   : > { %2462 = vmatprep.subr.bf16.mxu1 %v3369_v25 }
 0x2a0   : > { %2464 = vmatpush3.bf16.msra.mxu1 %v3044_v2 }
 0x2a1   : > { %2465 = vmatprep.subr.bf16.mxu1 %v3369_v25 }
 0x2a4   : > { %2467 = vmatpush3.bf16.msra.mxu1 %v3056_v12 }
 0x2a5   : > { %2468 = vmatprep.subr.bf16.mxu1 %v3369_v25 }
 0x2a8   : > { %2470 = vmatpush3.bf16.msra.mxu1 %v3068_v21 }
 0x2a9   : > { %2471 = vmatprep.subr.bf16.mxu1 %v3369_v25 }
 0x2ac   : > { %2473 = vmatpush3.bf16.msra.mxu1 %v3078_v30  ;;  %v988_v30 = vld [vmem:[%s2814_s15] sm:$0x30] }
 0x2ad   : > { %2474 = vmatprep.subr.bf16.mxu1 %v3369_v25 }
 0x2b0   : > { %2476 = vmatpush3.bf16.msra.mxu1 %v3090_v42 }
 0x2b1   : > { %2510 = vmatprep.subr.bf16.mxu1 %v3373_v4 }
 0x312   : > { %v909_v51 = vpop.f32.mrb[6].mxu0 }
 0x313   : > { %v1965_v22 = vpop.f32.mrb[7].mxu0 }
 0x346   : > { %v982_v40 = vpop.f32.mrb[6].mxu1  ;;  %v1058_v14 = vpop.f32.mrb[8].mxu0 }
 0x347   : > { %v983_v37 = vadd.f32 %v982_v40, %v909_v51  ;;  %v2000_v44 = vpop.f32.mrb[7].mxu1  ;;  %v1060_v23 = vpop.f32.mrb[9].mxu0  ;;  %v1138_v17 = vrot.slane %v1058_v14, 4  ;;  %v990_v40 = vld [vmem:[%s2814_s15 + $0x10] sm:$0x30] }
 0x348   : > { %v1139_v61 = vrot.slane %v1060_v23, 4 }
 0x349   : > { %v986_v62 = vadd.f32 %v3162_v29, %v983_v37  ;;  %v1146_v42 = vadd.f32 %v1138_v17, %v988_v30 }
 0x34a   : > { %v1147_v3 = vadd.f32 %v1139_v61, %v989_v48 }
 0x34b   : > { %2648 = vtanh.f32 %v986_v62  ;;  %v1716_v4 = vmul.f32 -1.442695, %v1146_v42 }
 0x34c   : > { %v1717_v6 = vmul.f32 -1.442695, %v1147_v3 }
 0x34e   : > { %2650 = vpow2.f32 %v1717_v6 }
 0x34f   : > { %2652 = vpow2.f32 %v1716_v4 }
 0x355   : > { %v2649_v21 = vpop.eup %2648 }
 0x356   : > { %2034 = vmatmul.mubr.f32.vlgmr.msra.gmra.mrb[10].mxu0 %v2649_v21 }
 0x357   : > { %2480 = vmatpush1.bf16.msra.mxu0 %v2822_v9  ;;  %1390 = vmatprep.mubr.f32.mxu0 %v3368_v8  ;;  %v1170_v9 = vrot.slane %v3187_v57, 6 }
 0x358   : > { %v2651_v51 = vpop.eup %2650  ;;  %2482 = vmatprep.subr.bf16.mxu0 %v2824_v10 }
 0x359   : > { %v1159_v22 = vadd.f32 1.0, %v2651_v51  ;;  %v2653_v21 = vpop.eup %2652 }
 0x35a   : > { %v1153_v30 = vadd.f32 1.0, %v2653_v21 }
 0x35b   : > { %2654 = vrcp.f32 %v1159_v22  ;;  %2484 = vmatpush1.bf16.msra.mxu0 %v2828_v15  ;;  %v991_v15 = vld [vmem:[%s2814_s15 + $0x18] sm:$0x30] }
 0x35c   : > { %2486 = vmatprep.subr.bf16.mxu0 %v2831_v18  ;;  %2656 = vrcp.f32 %v1153_v30 }
 0x35f   : > { %2488 = vmatpush1.bf16.msra.mxu0 %v2838_v27 }
 0x360   : > { %2490 = vmatprep.subr.bf16.mxu0 %v2842_v31 }
 0x363   : > { %2492 = vmatpush1.bf16.msra.mxu0 %v2851_v43 }
 0x364   : > { %2494 = vmatprep.subr.bf16.mxu0 %v2856_v47 }
 0x365   : > { %v2655_v10 = vpop.eup %2654 }
 0x366   : > { %v1172_v42 = vmul.f32 %v2655_v10, %v1170_v9  ;;  %v1129_v14 = vpop.f32.mrb[8].mxu1  ;;  %v2657_v47 = vpop.eup %2656 }
 0x367   : > { %v1140_v37 = vrot.slane %v1129_v14, 4  ;;  %v1131_v44 = vpop.f32.mrb[9].mxu1  ;;  %2496 = vmatpush1.bf16.msra.mxu0 %v2865_v56 }
 0x368   : > { %v1141_v18 = vrot.slane %v1131_v44, 4  ;;  %2498 = vmatprep.subr.bf16.mxu0 %v2868_v59 }
 0x369   : > { %v1148_v27 = vadd.f32 %v1140_v37, %v990_v40 }
 0x36a   : > { %v1149_v31 = vadd.f32 %v1141_v18, %v991_v15 }
 0x36b   : > { %2658 = vtanh.f32 %v1148_v27  ;;  %2500 = vmatpush1.bf16.msra.mxu0 %v2877_v7 }
 0x36c   : > { %v1718_v43 = vmul.f32 -1.442695, %v1149_v31  ;;  %2502 = vmatprep.subr.bf16.mxu0 %v2880_v11 }
 0x36e   : > { %2660 = vpow2.f32 %v1718_v43 }
 0x36f   : > { %2504 = vmatpush1.bf16.msra.mxu0 %v3370_v55 }
 0x370   : > { %2506 = vmatprep.subr.bf16.mxu0 %v3371_v28  ;;  %v1325_v28 = vld [vmem:[%s2814_s15 + $0x18] sm:$0xc0] }
 0x373   : > { %2508 = vmatpush1.bf16.msra.mxu0 %v3372_v36 }
 0x374   : > { %2541 = vmatprep.subr.bf16.mxu0 %v3369_v25 }
 0x375   : > { %v2659_v56 = vpop.eup %2658 }
 0x376   : > { %v1173_v59 = vmul.f32 %v2659_v56, %v2657_v47 }
 0x378   : > { %v2661_v57 = vpop.eup %2660  ;;  %v3266_v48 = vadd.f32 %v1173_v59, %v1172_v42 }
 0x379   : > { %v1166_v23 = vadd.f32 1.0, %v2661_v57 }
 0x37a   : > { %2662 = vtanh.f32 %v3266_v48 }
 0x37b   : > { %2664 = vrcp.f32 %v1166_v23 }
 0x384   : > { %v2663_v7 = vpop.eup %2662 }
 0x385   : > { %v2665_v11 = vpop.eup %2664 }
 0x386   : > { %v1176_v61 = vmul.f32 %v2665_v11, %v2663_v7 }
 0x388   : > { %v1248_v55 = vrot.slane %v1176_v61, 4 }
 0x38a   : > { %2069 = vmatmul.mubr.f32.vlgmr.msra.gmra.mrb[10].mxu1 %v1248_v55  ;;  %1391 = vmatmul.mubr.f32.vlgmr.msra.gmra.mrb[12].mxu0 %v1248_v55 }
 0x38b   : > { %2512 = vmatpush1.bf16.msra.mxu1 %v2835_v26  ;;  %1461 = vmatprep.mubr.f32.mxu1 %v3368_v8  ;;  %v3374_v26 = vld [vmem:[#allocation12_spill] sm:$0xff] }
 0x38c   : > { %2514 = vmatprep.subr.bf16.mxu1 %v2845_v34  ;;  %2543 = vmatpush3.bf16.msra.mxu0 %v2917_v52  ;;  %v3375_v34 = vld [vmem:[#allocation13_spill] sm:$0xff] }
 0x38d   : > { %2544 = vmatprep.subr.bf16.mxu0 %v3369_v25  ;;  %2103 = vmatprep.mubr.msk.f32.mxu0 %vm2732_vm0, %v3368_v8 }
 0x38f   : > { %2516 = vmatpush1.bf16.msra.mxu1 %v2847_v38  ;;  %v3376_v38 = vld [vmem:[#allocation14_spill] sm:$0xff] }
 0x390   : > { %2518 = vmatprep.subr.bf16.mxu1 %v2853_v46  ;;  %2546 = vmatpush3.bf16.msra.mxu0 %v2931_v60  ;;  %v1322_v60 = vld [vmem:[%s2814_s15] sm:$0xc0] }
 0x391   : > { %2547 = vmatprep.subr.bf16.mxu0 %v3369_v25 }
 0x393   : > { %2520 = vmatpush1.bf16.msra.mxu1 %v2859_v49 }
 0x394   : > { %2522 = vmatprep.subr.bf16.mxu1 %v2862_v53  ;;  %2549 = vmatpush3.bf16.msra.mxu0 %v2943_v0 }
 0x395   : > { %2550 = vmatprep.subr.bf16.mxu0 %v3369_v25 }
 0x397   : > { %2524 = vmatpush1.bf16.msra.mxu1 %v2871_v63 }
 0x398   : > { %2526 = vmatprep.subr.bf16.mxu1 %v2874_v1  ;;  %2552 = vmatpush3.bf16.msra.mxu0 %v2953_v5 }
 0x399   : > { %2553 = vmatprep.subr.bf16.mxu0 %v3369_v25 }
 0x39b   : > { %2528 = vmatpush1.bf16.msra.mxu1 %v2883_v16 }
 0x39c   : > { %2530 = vmatprep.subr.bf16.mxu1 %v2886_v19  ;;  %2555 = vmatpush3.bf16.msra.mxu0 %v2964_v13  ;;  %v1323_v19 = vld [vmem:[%s2814_s15 + $0x8] sm:$0xc0] }
 0x39d   : > { %2556 = vmatprep.subr.bf16.mxu0 %v3369_v25 }
 0x39f   : > { %2532 = vmatpush1.bf16.msra.mxu1 %v2895_v32 }
 0x3a0   : > { %2534 = vmatprep.subr.bf16.mxu1 %v2898_v33  ;;  %2558 = vmatpush3.bf16.msra.mxu0 %v2974_v20 }
 0x3a1   : > { %2559 = vmatprep.subr.bf16.mxu0 %v3369_v25 }
 0x3a3   : > { %2536 = vmatpush1.bf16.msra.mxu1 %v2905_v41 }
 0x3a4   : > { %2538 = vmatprep.subr.bf16.mxu1 %v2914_v45  ;;  %2561 = vmatpush3.bf16.msra.mxu0 %v2984_v24 }
 0x3a5   : > { %2562 = vmatprep.subr.bf16.mxu0 %v3369_v25 }
 0x3a7   : > { %2540 = vmatpush1.bf16.msra.mxu1 %v2920_v54 }
 0x3a8   : > { %2564 = vmatpush3.bf16.msra.mxu0 %v2994_v35  ;;  %2565 = vmatprep.subr.bf16.mxu1 %v3369_v25 }
 0x3aa   : > { %1462 = vmatmul.mubr.f32.vlgmr.msra.gmra.mrb[12].mxu1 %v1248_v55 }
 0x3ab   : > { %2567 = vmatpush3.bf16.msra.mxu1 %v3003_v39  ;;  %2138 = vmatprep.mubr.msk.f32.mxu1 %vm2732_vm0, %v3368_v8  ;;  %v1504_v39 = vrot.slane %v3266_v48, 6 }
 0x3ac   : > { %2568 = vmatprep.subr.bf16.mxu1 %v3369_v25 }
 0x3af   : > { %2570 = vmatpush3.bf16.msra.mxu1 %v3017_v50 }
 0x3b0   : > { %2571 = vmatprep.subr.bf16.mxu1 %v3369_v25 }
 0x3b3   : > { %2573 = vmatpush3.bf16.msra.mxu1 %v3032_v58 }
 0x3b4   : > { %2574 = vmatprep.subr.bf16.mxu1 %v3369_v25 }
 0x3b7   : > { %2576 = vmatpush3.bf16.msra.mxu1 %v3044_v2 }
 0x3b8   : > { %2577 = vmatprep.subr.bf16.mxu1 %v3369_v25 }
 0x3bb   : > { %2579 = vmatpush3.bf16.msra.mxu1 %v3056_v12  ;;  %v1324_v12 = vld [vmem:[%s2814_s15 + $0x10] sm:$0xc0] }
 0x3bc   : > { %2580 = vmatprep.subr.bf16.mxu1 %v3369_v25 }
 0x3bf   : > { %2582 = vmatpush3.bf16.msra.mxu1 %v3374_v26 }
 0x3c0   : > { %2583 = vmatprep.subr.bf16.mxu1 %v3369_v25 }
 0x3c3   : > { %2585 = vmatpush3.bf16.msra.mxu1 %v3375_v34 }
 0x3c4   : > { %2586 = vmatprep.subr.bf16.mxu1 %v3369_v25 }
 0x3c7   : > { %2588 = vmatpush3.bf16.msra.mxu1 %v3376_v38 }
 0x429   : > { %v1243_v46 = vpop.f32.mrb[10].mxu0 }
 0x42a   : > { %v2035_v49 = vpop.f32.mrb[11].mxu0 }
 0x45d   : > { %v1316_v53 = vpop.f32.mrb[10].mxu1  ;;  %v1392_v63 = vpop.f32.mrb[12].mxu0 }
 0x45e   : > { %v1317_v1 = vadd.f32 %v1316_v53, %v1243_v46  ;;  %v2070_v16 = vpop.f32.mrb[11].mxu1  ;;  %v1394_v32 = vpop.f32.mrb[13].mxu0  ;;  %v1472_v54 = vrot.slane %v1392_v63, 2 }
 0x45f   : > { %v1473_v33 = vrot.slane %v1394_v32, 2 }
 0x460   : > { %v1320_v41 = vadd.f32 %v3162_v29, %v1317_v1  ;;  %v1480_v0 = vadd.f32 %v1472_v54, %v1322_v60 }
 0x461   : > { %v1481_v45 = vadd.f32 %v1473_v33, %v1323_v19 }
 0x462   : > { %2666 = vtanh.f32 %v1320_v41  ;;  %v1719_v13 = vmul.f32 -1.442695, %v1480_v0 }
 0x463   : > { %v1720_v52 = vmul.f32 -1.442695, %v1481_v45 }
 0x465   : > { %2668 = vpow2.f32 %v1720_v52 }
 0x466   : > { %2670 = vpow2.f32 %v1719_v13 }
 0x46c   : > { %v2667_v5 = vpop.eup %2666 }
 0x46d   : > { %2104 = vmatmul.mubr.f32.vlgmr.msra.gmra.mrb[14].mxu0 %v2667_v5 }
 0x46f   : > { %v2669_v20 = vpop.eup %2668 }
 0x470   : > { %v1493_v24 = vadd.f32 1.0, %v2669_v20  ;;  %v2671_v35 = vpop.eup %2670 }
 0x471   : > { %v1487_v58 = vadd.f32 1.0, %v2671_v35 }
 0x472   : > { %2672 = vrcp.f32 %v1493_v24 }
 0x473   : > { %2674 = vrcp.f32 %v1487_v58 }
 0x47c   : > { %v2673_v50 = vpop.eup %2672 }
 0x47d   : > { %v1506_v2 = vmul.f32 %v2673_v50, %v1504_v39  ;;  %v1463_v8 = vpop.f32.mrb[12].mxu1  ;;  %v2675_v4 = vpop.eup %2674 }
 0x47e   : > { %v1474_v25 = vrot.slane %v1463_v8, 2  ;;  %v1465_v36 = vpop.f32.mrb[13].mxu1 }
 0x47f   : > { %v1475_v62 = vrot.slane %v1465_v36, 2 }
 0x480   : > { %v1482_v3 = vadd.f32 %v1474_v25, %v1324_v12 }
 0x481   : > { %v1483_v6 = vadd.f32 %v1475_v62, %v1325_v28 }
 0x482   : > { %2676 = vtanh.f32 %v1482_v3 }
 0x483   : > { %v1721_v17 = vmul.f32 -1.442695, %v1483_v6 }
 0x485   : > { %2678 = vpow2.f32 %v1721_v17 }
 0x48c   : > { %v2677_v51 = vpop.eup %2676 }
 0x48d   : > { %v1507_v22 = vmul.f32 %v2677_v51, %v2675_v4 }
 0x48f   : > { %v2679_v21 = vpop.eup %2678  ;;  %v1508_v9 = vadd.f32 %v1507_v22, %v1506_v2 }
 0x490   : > { %v1500_v10 = vadd.f32 1.0, %v2679_v21 }
 0x491   : > { %2680 = vtanh.f32 %v1508_v9  ;;  %1657 = vst [vmem:[#allocation3 - $0x6] sm:$0xc0] %v1508_v9 }
 0x492   : > { %2682 = vrcp.f32 %v1500_v10 }
 0x49b   : > { %v2681_v30 = vpop.eup %2680 }
 0x49c   : > { %v2683_v42 = vpop.eup %2682 }
 0x49d   : > { %v1510_v40 = vmul.f32 %v2683_v42, %v2681_v30 }
 0x49f   : > { %v1582_v14 = vrot.slane %v1510_v40, 6  ;;  %1656 = vst [vmem:[#allocation2 - $0x6] sm:$0xc0] %v1510_v40 }
 0x4a1   : > { %2139 = vmatmul.mubr.f32.vlgmr.msra.gmra.mrb[14].mxu1 %v1582_v14 }
 0x540   : > { %v1577_v37 = vpop.f32.mrb[14].mxu0 }
 0x541   : > { %v2105_v15 = vpop.f32.mrb[15].mxu0 }
 0x574   : > { %v1650_v44 = vpop.f32.mrb[14].mxu1 }
 0x575   : > { %v1651_v18 = vadd.f32 %v1650_v44, %v1577_v37  ;;  %v2140_v27 = vpop.f32.mrb[15].mxu1 }
 0x577   : > { %v1654_v31 = vadd.f32 %v3162_v29, %v1651_v18 }
 0x579   : > { %2684 = vtanh.f32 %v1654_v31 }
 0x583   : > { %v2685_v43 = vpop.eup %2684 }
 0x584   : > { %1658 = vst [vmem:[#allocation4] sm:$0x3] %v2685_v43  ;;  %1659 = vst [vmem:[%s3338_s5] sm:$0x3] %v2685_v43 }
 0x585 PF: > { %s16_s18 = sadd.s32 1, %s2724_s18  }
 0x586   : > { %p13_p4 = scmp.ge.s32.totalorder %s16_s18, 4  }
 0x588   :  { %15 = sbr.rel (!%p13_p4) target bundleno = 1 (0x1), region = 75 }
 0x58f   :  { %1671 = vsyncpa [#allocation6], 1 }
 0x590   :  { %1673 = vsyncpa [#allocation6 + $0x1], 1 }

</bundles_post_ra>
